<compile_context>
chip_gen: v6e
topology: v6e:2x2x1
jax: 0.10.0
libtpu: 0.0.40
codegen_flags: <defaults>
</compile_context>

<pallas_src>
import functools

import jax
import jax.numpy as jnp
from jax.experimental import pallas as pl
from jax.experimental.pallas import tpu as pltpu


def _rup(x, m):
    return ((x + m - 1) // m) * m


# ----------------------------- tiled linear (matmul) kernels -----------------------------

def _matmul_acc_kernel(x_ref, w_ref, o_ref, acc_ref):
    """bf16 (or non-f32) output: accumulate in an f32 VMEM scratch, cast on the last K step."""
    @pl.when(pl.program_id(2) == 0)
    def _():
        acc_ref[...] = jnp.zeros_like(acc_ref)

    acc_ref[...] += jnp.dot(x_ref[...], w_ref[...], preferred_element_type=jnp.float32)

    @pl.when(pl.program_id(2) == pl.num_programs(2) - 1)
    def _():
        o_ref[...] = acc_ref[...].astype(o_ref.dtype)


def _matmul_f32out_kernel(x_ref, w_ref, o_ref):
    """f32 output: accumulate directly into the resident output block (no scratch/copy)."""
    @pl.when(pl.program_id(2) == 0)
    def _():
        o_ref[...] = jnp.zeros_like(o_ref)

    o_ref[...] += jnp.dot(x_ref[...], w_ref[...], preferred_element_type=jnp.float32)


def _linear(x2d, wt, out_dtype=jnp.bfloat16, tm_cap=256, tn_cap=512, tk_cap=512):
    """x2d: (M, K) bf16; wt: (K, N) bf16 (weight already transposed). Returns (M, N)."""
    M, K = x2d.shape
    N = wt.shape[1]

    # M / N tiles: full dim when small (always legal), else 8/128-aligned caps; partial
    # edge blocks are handled by Pallas masked stores — no activation padding needed.
    tm = M if M <= tm_cap else tm_cap
    tn = N if N <= tn_cap else tn_cap

    # K tile: full K when small; else a 128-multiple divisor of K; pad K only as a last
    # resort (garbage in a partial K tile would contaminate valid outputs).
    if K <= tk_cap:
        tk, Kp = K, K
    else:
        tk = 0
        for t in range(tk_cap, 0, -128):
            if K % t == 0:
                tk = t
                break
        if tk:
            Kp = K
        else:
            tk = tk_cap
            Kp = _rup(K, tk)
            x2d = jnp.pad(x2d, ((0, 0), (0, Kp - K)))
            wt = jnp.pad(wt, ((0, Kp - K), (0, 0)))

    grid = (pl.cdiv(M, tm), pl.cdiv(N, tn), Kp // tk)

    f32_direct = out_dtype == jnp.float32
    kernel = _matmul_f32out_kernel if f32_direct else _matmul_acc_kernel
    scratch = [] if f32_direct else [pltpu.VMEM((tm, tn), jnp.float32)]

    osize = jnp.dtype(out_dtype).itemsize
    need = 2 * (tm * tk * 2 + tk * tn * 2 + tm * tn * osize)  # double-buffered blocks
    if not f32_direct:
        need += tm * tn * 4
    vmem = int(min(max(2 * need, 16 * 1024 * 1024), 48 * 1024 * 1024))

    return pl.pallas_call(
        kernel,
        out_shape=jax.ShapeDtypeStruct((M, N), out_dtype),
        grid_spec=pltpu.PrefetchScalarGridSpec(
            num_scalar_prefetch=0,
            grid=grid,
            in_specs=[
                pl.BlockSpec((tm, tk), lambda i, j, k: (i, k)),
                pl.BlockSpec((tk, tn), lambda i, j, k: (k, j)),
            ],
            out_specs=pl.BlockSpec((tm, tn), lambda i, j, k: (i, j)),
            scratch_shapes=scratch,
        ),
        compiler_params=pltpu.CompilerParams(
            dimension_semantics=("parallel", "parallel", "arbitrary"),
            vmem_limit_bytes=vmem,
        ),
    )(x2d, wt)


# ----------------------------- flash-style attention kernel -----------------------------

def _flash_attn_kernel(*refs, H, Dh, nk, tkv, need_mask, interleaved):
    """Online-softmax attention over a KV grid axis.

    interleaved=False: refs = (q_ref, k_ref, v_ref, o_ref, m, l, acc); k/v blocks are each
                       HDh wide, heads packed [h0 | h1 | ...].
    interleaved=True:  refs = (q_ref, kv_ref, o_ref, m, l, acc); kv block is 2*HDh wide,
                       heads packed [k0 v0 | k1 v1 | ...].
    Softmax scale is pre-folded into the q projection weights.
    """
    if interleaved:
        q_ref, kv_ref, o_ref, m_sc, l_sc, acc_sc = refs
    else:
        q_ref, k_ref, v_ref, o_ref, m_sc, l_sc, acc_sc = refs

    kt = pl.program_id(2)

    @pl.when(kt == 0)
    def _init():
        m_sc[...] = jnp.full_like(m_sc, -1e30)
        l_sc[...] = jnp.zeros_like(l_sc)
        acc_sc[...] = jnp.zeros_like(acc_sc)

    q_all = q_ref[0]                       # (tq, H*Dh) bf16, scale pre-folded
    if interleaved:
        kv_all = kv_ref[0]                 # (tkv, 2*H*Dh) bf16
    else:
        k_all = k_ref[0]                   # (tkv, H*Dh) bf16
        v_all = v_ref[0]                   # (tkv, H*Dh) bf16

    if need_mask:
        kv_ids = jax.lax.broadcasted_iota(jnp.int32, (1, tkv), 1) + kt * tkv
        kv_valid = kv_ids < nk             # (1, tkv)

    for g in range(H):                     # static unroll over heads
        q_h = q_all[:, g * Dh:(g + 1) * Dh]
        if interleaved:
            k_h = kv_all[:, (2 * g) * Dh:(2 * g + 1) * Dh]
            v_h = kv_all[:, (2 * g + 1) * Dh:(2 * g + 2) * Dh]
        else:
            k_h = k_all[:, g * Dh:(g + 1) * Dh]
            v_h = v_all[:, g * Dh:(g + 1) * Dh]

        # q @ k^T contracting the head dim; f32 accumulation on the MXU.
        s = jax.lax.dot_general(q_h, k_h, (((1,), (1,)), ((), ())),
                                preferred_element_type=jnp.float32)   # (tq, tkv)
        if need_mask:
            s = jnp.where(kv_valid, s, -1e30)

        m_prev = m_sc[g]                                              # (tq, 1)
        m_new = jnp.maximum(m_prev, jnp.max(s, axis=-1, keepdims=True))
        alpha = jnp.exp(m_prev - m_new)
        p = jnp.exp(s - m_new)                                        # (tq, tkv) f32
        l_sc[g] = alpha * l_sc[g] + jnp.sum(p, axis=-1, keepdims=True)
        acc_sc[g] = alpha * acc_sc[g] + jnp.dot(
            p.astype(v_h.dtype), v_h, preferred_element_type=jnp.float32)
        m_sc[g] = m_new

    @pl.when(kt == pl.num_programs(2) - 1)
    def _finalize():
        # Exact reciprocal: EUP slot is idle in the epilogue, so this is free.
        outs = [acc_sc[g] * pl.reciprocal(l_sc[g], approx=False) for g in range(H)]
        # Single lane-dense store of all heads at once.
        o_ref[0] = jnp.concatenate(outs, axis=-1).astype(o_ref.dtype)


def _attention(q_arr, kv_arr, *, heads, dim_head, kv_slot0=0, interleaved=False):
    """q_arr: (B, Nq, Wq) bf16 with q in the first HDh-wide feature block.
    kv_arr: (B, Nk, Wkv) bf16.
      interleaved=False: k / v are HDh-wide feature blocks kv_slot0 / kv_slot0+1.
      interleaved=True:  single full-width (2*HDh) kv block, per-head [k_g, v_g] interleave.
    Returns (B, Nq, H*Dh) bf16."""
    B, Nq, _ = q_arr.shape
    Nk = kv_arr.shape[1]
    H, Dh = heads, dim_head
    HDh = H * Dh

    tq = Nq if Nq <= 256 else 256
    tkv = Nk if Nk <= 256 else 256
    need_mask = (Nk % tkv) != 0
    if need_mask:
        # Zero-pad the KV tail so masked (p == 0) columns never multiply stale garbage.
        Nk_p = _rup(Nk, tkv)
        kv_arr = jnp.pad(kv_arr, ((0, 0), (0, Nk_p - Nk), (0, 0)))
    else:
        Nk_p = Nk

    grid = (B, pl.cdiv(Nq, tq), Nk_p // tkv)

    q_spec = pl.BlockSpec((1, tq, HDh), lambda b, qt, kt: (b, qt, 0))
    if interleaved:
        in_specs = [q_spec,
                    pl.BlockSpec((1, tkv, 2 * HDh), lambda b, qt, kt: (b, kt, 0))]
        args = (q_arr, kv_arr)
    else:
        s0 = kv_slot0
        in_specs = [q_spec,
                    pl.BlockSpec((1, tkv, HDh), lambda b, qt, kt: (b, kt, s0)),
                    pl.BlockSpec((1, tkv, HDh), lambda b, qt, kt: (b, kt, s0 + 1))]
        args = (q_arr, kv_arr, kv_arr)

    kernel = functools.partial(_flash_attn_kernel, H=H, Dh=Dh, nk=Nk, tkv=tkv,
                               need_mask=need_mask, interleaved=interleaved)

    # VMEM budget: double-buffered bf16 blocks + f32 scratch, clamped for v7x (64 MiB phys).
    blk = 2 * (tq * HDh * 2 + tkv * 2 * HDh * 2 + tq * HDh * 2)
    scr = H * tq * (Dh + 2) * 4
    vmem = int(min(max(2 * (blk + scr), 16 * 1024 * 1024), 48 * 1024 * 1024))

    return pl.pallas_call(
        kernel,
        out_shape=jax.ShapeDtypeStruct((B, Nq, HDh), q_arr.dtype),
        grid_spec=pltpu.PrefetchScalarGridSpec(
            num_scalar_prefetch=0,
            grid=grid,
            in_specs=in_specs,
            out_specs=pl.BlockSpec((1, tq, HDh), lambda b, qt, kt: (b, qt, 0)),
            scratch_shapes=[
                pltpu.VMEM((H, tq, 1), jnp.float32),    # running max
                pltpu.VMEM((H, tq, 1), jnp.float32),    # running denom
                pltpu.VMEM((H, tq, Dh), jnp.float32),   # running output accumulator
            ],
        ),
        compiler_params=pltpu.CompilerParams(
            dimension_semantics=("parallel", "parallel", "arbitrary"),
            vmem_limit_bytes=vmem,
        ),
    )(*args)


# ------------------------------------ module wrapper ------------------------------------

class AttentionPallas:
    """JAX/Pallas port of the PyTorch `Attention` module (forward semantics preserved)."""

    def __init__(self, query_dim, context_dim=None, heads=8, dim_head=64, key=None):
        inner_dim = dim_head * heads
        context_dim = query_dim if context_dim is None else context_dim
        self.scale = dim_head ** (-0.5)
        self.heads = heads
        self.dim_head = dim_head
        self.query_dim = query_dim
        if key is None:
            key = jax.random.PRNGKey(42)
        kq, kkv, ko = jax.random.split(key, 3)
        # Reference weights, PyTorch nn.Linear layout (out_features, in_features), f32.
        self.w_q = jax.random.normal(kq, (inner_dim, query_dim), jnp.float32) / jnp.sqrt(query_dim)
        self.w_kv = jax.random.normal(kkv, (inner_dim * 2, context_dim), jnp.float32) / jnp.sqrt(context_dim)
        self.w_out = jax.random.normal(ko, (query_dim, inner_dim), jnp.float32) / jnp.sqrt(inner_dim)

        # --- pre-transposed / pre-cast bf16 kernel weights (hoisted out of forward) ---
        # Softmax scale folded into q: (q*s) k^T == s (q k^T), exact.
        w_q_t = self.w_q.T * self.scale                 # (Dq, HDh)
        w_kv_t = self.w_kv.T                            # (Dc, 2*HDh), column order [k_all | v_all]
        self.lane_dense = (inner_dim % 128 == 0)
        if self.lane_dense:
            # q/k/v consumed as HDh-wide lane-dense blocks of the packed projection outputs.
            self.w_q_t = jnp.asarray(w_q_t, jnp.bfloat16)
            self.w_kv_t = jnp.asarray(w_kv_t, jnp.bfloat16)
            if context_dim == query_dim:
                # Fused qkv projection for the self-attention path: one pass over x,
                # packed output [q | k_all | v_all] read directly by the attention kernel.
                self.w_qkv_t = jnp.asarray(jnp.concatenate([w_q_t, w_kv_t], axis=1), jnp.bfloat16)
            else:
                self.w_qkv_t = None
        else:
            # inner_dim below a lane multiple: permute kv columns per-head ([k_g, v_g]
            # interleave) so the attention kernel reads one FULL-width kv block (legal,
            # lane-dense) instead of a misaligned HDh-wide block.
            Dc = context_dim
            w_kv_inter = (w_kv_t.reshape(Dc, 2, heads, dim_head)
                          .transpose(0, 2, 1, 3).reshape(Dc, 2 * inner_dim))
            self.w_q_t = jnp.asarray(w_q_t, jnp.bfloat16)
            self.w_kv_t = jnp.asarray(w_kv_inter, jnp.bfloat16)
            self.w_qkv_t = None
        self.w_out_t = jnp.asarray(self.w_out.T, jnp.bfloat16)

    def __call__(self, x, context=None, mask=None):
        # TODO(synk): `mask` is accepted but unused — the PyTorch reference forward ignores it too.
        B, Nq, Dq = x.shape
        self_attn = context is None
        context = x if self_attn else context
        Nk, Dc = context.shape[1], context.shape[2]
        H, Dh = self.heads, self.dim_head
        HDh = H * Dh

        xb = x.astype(jnp.bfloat16).reshape(B * Nq, Dq)

        if self.lane_dense and self_attn and self.w_qkv_t is not None:
            # Single fused projection; q/k/v blocks sliced out by the attention BlockSpecs.
            qkv = _linear(xb, self.w_qkv_t, out_dtype=jnp.bfloat16).reshape(B, Nq, 3 * HDh)
            o = _attention(qkv, qkv, heads=H, dim_head=Dh, kv_slot0=1, interleaved=False)
        else:
            cb = context.astype(jnp.bfloat16).reshape(B * Nk, Dc)
            q = _linear(xb, self.w_q_t, out_dtype=jnp.bfloat16).reshape(B, Nq, HDh)
            kv = _linear(cb, self.w_kv_t, out_dtype=jnp.bfloat16).reshape(B, Nk, 2 * HDh)
            o = _attention(q, kv, heads=H, dim_head=Dh, kv_slot0=0,
                           interleaved=not self.lane_dense)

        out = _linear(o.reshape(B * Nq, HDh), self.w_out_t, out_dtype=jnp.float32)
        return out.reshape(B, Nq, Dq)


# ---------------------------------------- reference ----------------------------------------

def _reference(mod, x, context=None):
    h, dh = mod.heads, mod.dim_head
    B, Nq, _ = x.shape
    context = x if context is None else context
    Nk = context.shape[1]
    q = x @ mod.w_q.T
    kv = context @ mod.w_kv.T
    k, v = jnp.split(kv, 2, axis=-1)

    def to_heads(t, n):
        return t.reshape(B, n, h, dh).transpose(0, 2, 1, 3)

    qh, kh, vh = to_heads(q, Nq), to_heads(k, Nk), to_heads(v, Nk)
    s = jnp.einsum("bhqd,bhkd->bhqk", qh, kh) * mod.scale
    p = jax.nn.softmax(s, axis=-1)
    o = jnp.einsum("bhqk,bhkd->bhqd", p, vh)
    o = o.transpose(0, 2, 1, 3).reshape(B, Nq, h * dh)
    return o @ mod.w_out.T


# ------------------------------------------ main ------------------------------------------

if __name__ == "__main__":
    key = jax.random.PRNGKey(0)
    k1, k2, k3, k4, kp1, kp2 = jax.random.split(key, 6)

    # Config A: inner_dim = heads*dim_head = 64 (< 128 lanes) -> per-head-interleaved kv path.
    B, Nq, Nk = 2, 8, 8
    qd_a, cd_a, h_a, dh_a = 32, 32, 4, 16
    xa = jax.random.normal(k1, (B, Nq, qd_a), jnp.float32)
    ca = jax.random.normal(k2, (B, Nk, cd_a), jnp.float32)
    attn_a = AttentionPallas(qd_a, context_dim=cd_a, heads=h_a, dim_head=dh_a, key=kp1)

    out_a_cross = jax.jit(lambda x, c: attn_a(x, c))(xa, ca)   # cross-attention
    out_a_self = jax.jit(lambda x: attn_a(x))(xa)              # self-attention
    jax.block_until_ready((out_a_cross, out_a_self))

    ref_a_cross = _reference(attn_a, xa, ca)
    ref_a_self = _reference(attn_a, xa)
    assert out_a_cross.shape == (B, Nq, qd_a)
    assert out_a_self.shape == (B, Nq, qd_a)
    assert jnp.allclose(out_a_cross, ref_a_cross, atol=5e-2, rtol=5e-2)
    assert jnp.allclose(out_a_self, ref_a_self, atol=5e-2, rtol=5e-2)

    # Config B: inner_dim = 128 (lane-dense) -> HDh-wide q/k/v blocks; fused qkv projection
    # on the self-attention path.
    Nk_b = 16
    qd_b, cd_b, h_b, dh_b = 64, 64, 2, 64
    xb_ = jax.random.normal(k3, (B, Nq, qd_b), jnp.float32)
    cb_ = jax.random.normal(k4, (B, Nk_b, cd_b), jnp.float32)
    attn_b = AttentionPallas(qd_b, context_dim=cd_b, heads=h_b, dim_head=dh_b, key=kp2)

    out_b_cross = jax.jit(lambda x, c: attn_b(x, c))(xb_, cb_)
    out_b_self = jax.jit(lambda x: attn_b(x))(xb_)
    jax.block_until_ready((out_b_cross, out_b_self))

    ref_b_cross = _reference(attn_b, xb_, cb_)
    ref_b_self = _reference(attn_b, xb_)
    assert out_b_cross.shape == (B, Nq, qd_b)
    assert out_b_self.shape == (B, Nq, qd_b)
    assert jnp.allclose(out_b_cross, ref_b_cross, atol=5e-2, rtol=5e-2)
    assert jnp.allclose(out_b_self, ref_b_self, atol=5e-2, rtol=5e-2)

    print("KERNEL_OK")
</pallas_src>

<mosaic_0001>
module attributes {stable_mosaic.version = 11 : i64} {
  func.func @_matmul_acc_kernel(%arg0: i32, %arg1: i32, %arg2: i32, %arg3: memref<16x32xbf16, #tpu.memory_space<vmem>>, %arg4: memref<32x128xbf16, #tpu.memory_space<vmem>>, %arg5: memref<16x128xbf16, #tpu.memory_space<vmem>>, %arg6: memref<16x128xf32, #tpu.memory_space<vmem>>) attributes {dimension_semantics = [#tpu.dimension_semantics<parallel>, #tpu.dimension_semantics<parallel>, #tpu.dimension_semantics<arbitrary>], iteration_bounds = array<i64: 1, 1, 1>, scalar_prefetch = 0 : i64, scratch_operands = 1 : i64, tpu.core_type = #tpu.core_type<tc>, window_params = [{transform_indices = @transform_0, window_bounds = array<i64: 16, 32>}, {transform_indices = @transform_1, window_bounds = array<i64: 32, 128>}, {transform_indices = @transform_2, window_bounds = array<i64: 16, 128>}]} {
    %c0_i32 = arith.constant 0 : i32
    %0 = arith.cmpi eq, %arg2, %c0_i32 : i32
    %1 = arith.extui %0 : i1 to i32
    %c0_i32_0 = arith.constant 0 : i32
    %2 = arith.cmpi ne, %1, %c0_i32_0 : i32
    scf.if %2 {
      %cst_10 = arith.constant 0.000000e+00 : f32
      %12 = vector.broadcast %cst_10 : f32 to vector<16x128xf32>
      %c0_11 = arith.constant 0 : index
      %c0_12 = arith.constant 0 : index
      %13 = vector.load %arg6[%c0_11, %c0_12] : memref<16x128xf32, #tpu.memory_space<vmem>>, vector<16x128xf32>
      tpu.vector_store %arg6[%c0_11, %c0_12], %12 {strides = array<i32>} : memref<16x128xf32, #tpu.memory_space<vmem>>, vector<16x128xf32>,
    } else {
    }
    %c0 = arith.constant 0 : index
    %c0_1 = arith.constant 0 : index
    %3 = vector.load %arg6[%c0, %c0_1] : memref<16x128xf32, #tpu.memory_space<vmem>>, vector<16x128xf32>
    %c0_2 = arith.constant 0 : index
    %c0_3 = arith.constant 0 : index
    %4 = vector.load %arg3[%c0_2, %c0_3] : memref<16x32xbf16, #tpu.memory_space<vmem>>, vector<16x32xbf16>
    %c0_4 = arith.constant 0 : index
    %c0_5 = arith.constant 0 : index
    %5 = vector.load %arg4[%c0_4, %c0_5] : memref<32x128xbf16, #tpu.memory_space<vmem>>, vector<32x128xbf16>
    %cst = arith.constant dense<0.000000e+00> : vector<16x128xf32>
    %6 = tpu.matmul %4, %5, %cst {dimension_numbers = #tpu.dot_dimension_numbers<[1], [0], [0], [1], [0, 0, 1, 1], [], []>} : vector<16x32xbf16>, vector<32x128xbf16>, vector<16x128xf32> -> vector<16x128xf32>
    %7 = arith.addf %3, %6 : vector<16x128xf32>
    %c0_6 = arith.constant 0 : index
    %c0_7 = arith.constant 0 : index
    %8 = vector.load %arg6[%c0_6, %c0_7] : memref<16x128xf32, #tpu.memory_space<vmem>>, vector<16x128xf32>
    tpu.vector_store %arg6[%c0_6, %c0_7], %7 {strides = array<i32>} : memref<16x128xf32, #tpu.memory_space<vmem>>, vector<16x128xf32>,
    %c0_i32_8 = arith.constant 0 : i32
    %9 = arith.cmpi eq, %arg2, %c0_i32_8 : i32
    %10 = arith.extui %9 : i1 to i32
    %c0_i32_9 = arith.constant 0 : i32
    %11 = arith.cmpi ne, %10, %c0_i32_9 : i32
    scf.if %11 {
      %c0_10 = arith.constant 0 : index
      %c0_11 = arith.constant 0 : index
      %12 = vector.load %arg6[%c0_10, %c0_11] : memref<16x128xf32, #tpu.memory_space<vmem>>, vector<16x128xf32>
      %13 = arith.truncf %12 : vector<16x128xf32> to vector<16x128xbf16>
      %c0_12 = arith.constant 0 : index
      %c0_13 = arith.constant 0 : index
      %14 = vector.load %arg5[%c0_12, %c0_13] : memref<16x128xbf16, #tpu.memory_space<vmem>>, vector<16x128xbf16>
      tpu.vector_store %arg5[%c0_12, %c0_13], %13 {strides = array<i32>} : memref<16x128xbf16, #tpu.memory_space<vmem>>, vector<16x128xbf16>,
    } else {
    }
    return
  }
  func.func @transform_0(%arg0: i32, %arg1: i32, %arg2: i32) -> (i32, i32) {
    %c0_i32 = arith.constant 0 : i32
    return %arg0, %arg2 : i32, i32
  }
  func.func @transform_1(%arg0: i32, %arg1: i32, %arg2: i32) -> (i32, i32) {
    %c0_i32 = arith.constant 0 : i32
    return %arg2, %arg1 : i32, i32
  }
  func.func @transform_2(%arg0: i32, %arg1: i32, %arg2: i32) -> (i32, i32) {
    %c0_i32 = arith.constant 0 : i32
    return %arg0, %arg1 : i32, i32
  }
}

module attributes {stable_mosaic.version = 11 : i64} {
  func.func @_matmul_acc_kernel(%arg0: i32, %arg1: i32, %arg2: i32, %arg3: memref<16x32xbf16, #tpu.memory_space<vmem>>, %arg4: memref<32x64xbf16, #tpu.memory_space<vmem>>, %arg5: memref<16x64xbf16, #tpu.memory_space<vmem>>, %arg6: memref<16x64xf32, #tpu.memory_space<vmem>>) attributes {dimension_semantics = [#tpu.dimension_semantics<parallel>, #tpu.dimension_semantics<parallel>, #tpu.dimension_semantics<arbitrary>], iteration_bounds = array<i64: 1, 1, 1>, scalar_prefetch = 0 : i64, scratch_operands = 1 : i64, tpu.core_type = #tpu.core_type<tc>, window_params = [{transform_indices = @transform_0, window_bounds = array<i64: 16, 32>}, {transform_indices = @transform_1, window_bounds = array<i64: 32, 64>}, {transform_indices = @transform_2, window_bounds = array<i64: 16, 64>}]} {
    %c0_i32 = arith.constant 0 : i32
    %0 = arith.cmpi eq, %arg2, %c0_i32 : i32
    %1 = arith.extui %0 : i1 to i32
    %c0_i32_0 = arith.constant 0 : i32
    %2 = arith.cmpi ne, %1, %c0_i32_0 : i32
    scf.if %2 {
      %cst_10 = arith.constant 0.000000e+00 : f32
      %12 = vector.broadcast %cst_10 : f32 to vector<16x64xf32>
      %c0_11 = arith.constant 0 : index
      %c0_12 = arith.constant 0 : index
      %13 = vector.load %arg6[%c0_11, %c0_12] : memref<16x64xf32, #tpu.memory_space<vmem>>, vector<16x64xf32>
      tpu.vector_store %arg6[%c0_11, %c0_12], %12 {strides = array<i32>} : memref<16x64xf32, #tpu.memory_space<vmem>>, vector<16x64xf32>,
    } else {
    }
    %c0 = arith.constant 0 : index
    %c0_1 = arith.constant 0 : index
    %3 = vector.load %arg6[%c0, %c0_1] : memref<16x64xf32, #tpu.memory_space<vmem>>, vector<16x64xf32>
    %c0_2 = arith.constant 0 : index
    %c0_3 = arith.constant 0 : index
    %4 = vector.load %arg3[%c0_2, %c0_3] : memref<16x32xbf16, #tpu.memory_space<vmem>>, vector<16x32xbf16>
    %c0_4 = arith.constant 0 : index
    %c0_5 = arith.constant 0 : index
    %5 = vector.load %arg4[%c0_4, %c0_5] : memref<32x64xbf16, #tpu.memory_space<vmem>>, vector<32x64xbf16>
    %cst = arith.constant dense<0.000000e+00> : vector<16x64xf32>
    %6 = tpu.matmul %4, %5, %cst {dimension_numbers = #tpu.dot_dimension_numbers<[1], [0], [0], [1], [0, 0, 1, 1], [], []>} : vector<16x32xbf16>, vector<32x64xbf16>, vector<16x64xf32> -> vector<16x64xf32>
    %7 = arith.addf %3, %6 : vector<16x64xf32>
    %c0_6 = arith.constant 0 : index
    %c0_7 = arith.constant 0 : index
    %8 = vector.load %arg6[%c0_6, %c0_7] : memref<16x64xf32, #tpu.memory_space<vmem>>, vector<16x64xf32>
    tpu.vector_store %arg6[%c0_6, %c0_7], %7 {strides = array<i32>} : memref<16x64xf32, #tpu.memory_space<vmem>>, vector<16x64xf32>,
    %c0_i32_8 = arith.constant 0 : i32
    %9 = arith.cmpi eq, %arg2, %c0_i32_8 : i32
    %10 = arith.extui %9 : i1 to i32
    %c0_i32_9 = arith.constant 0 : i32
    %11 = arith.cmpi ne, %10, %c0_i32_9 : i32
    scf.if %11 {
      %c0_10 = arith.constant 0 : index
      %c0_11 = arith.constant 0 : index
      %12 = vector.load %arg6[%c0_10, %c0_11] : memref<16x64xf32, #tpu.memory_space<vmem>>, vector<16x64xf32>
      %13 = arith.truncf %12 : vector<16x64xf32> to vector<16x64xbf16>
      %c0_12 = arith.constant 0 : index
      %c0_13 = arith.constant 0 : index
      %14 = vector.load %arg5[%c0_12, %c0_13] : memref<16x64xbf16, #tpu.memory_space<vmem>>, vector<16x64xbf16>
      tpu.vector_store %arg5[%c0_12, %c0_13], %13 {strides = array<i32>} : memref<16x64xbf16, #tpu.memory_space<vmem>>, vector<16x64xbf16>,
    } else {
    }
    return
  }
  func.func @transform_0(%arg0: i32, %arg1: i32, %arg2: i32) -> (i32, i32) {
    %c0_i32 = arith.constant 0 : i32
    return %arg0, %arg2 : i32, i32
  }
  func.func @transform_1(%arg0: i32, %arg1: i32, %arg2: i32) -> (i32, i32) {
    %c0_i32 = arith.constant 0 : i32
    return %arg2, %arg1 : i32, i32
  }
  func.func @transform_2(%arg0: i32, %arg1: i32, %arg2: i32) -> (i32, i32) {
    %c0_i32 = arith.constant 0 : i32
    return %arg0, %arg1 : i32, i32
  }
}

module attributes {stable_mosaic.version = 11 : i64} {
  func.func @_matmul_f32out_kernel(%arg0: i32, %arg1: i32, %arg2: i32, %arg3: memref<16x64xbf16, #tpu.memory_space<vmem>>, %arg4: memref<64x32xbf16, #tpu.memory_space<vmem>>, %arg5: memref<16x32xf32, #tpu.memory_space<vmem>>) attributes {dimension_semantics = [#tpu.dimension_semantics<parallel>, #tpu.dimension_semantics<parallel>, #tpu.dimension_semantics<arbitrary>], iteration_bounds = array<i64: 1, 1, 1>, scalar_prefetch = 0 : i64, scratch_operands = 0 : i64, tpu.core_type = #tpu.core_type<tc>, window_params = [{transform_indices = @transform_0, window_bounds = array<i64: 16, 64>}, {transform_indices = @transform_1, window_bounds = array<i64: 64, 32>}, {transform_indices = @transform_2, window_bounds = array<i64: 16, 32>}]} {
    %c0_i32 = arith.constant 0 : i32
    %0 = arith.cmpi eq, %arg2, %c0_i32 : i32
    %1 = arith.extui %0 : i1 to i32
    %c0_i32_0 = arith.constant 0 : i32
    %2 = arith.cmpi ne, %1, %c0_i32_0 : i32
    scf.if %2 {
      %cst_8 = arith.constant 0.000000e+00 : f32
      %9 = vector.broadcast %cst_8 : f32 to vector<16x32xf32>
      %c0_9 = arith.constant 0 : index
      %c0_10 = arith.constant 0 : index
      %10 = vector.load %arg5[%c0_9, %c0_10] : memref<16x32xf32, #tpu.memory_space<vmem>>, vector<16x32xf32>
      tpu.vector_store %arg5[%c0_9, %c0_10], %9 {strides = array<i32>} : memref<16x32xf32, #tpu.memory_space<vmem>>, vector<16x32xf32>,
    } else {
    }
    %c0 = arith.constant 0 : index
    %c0_1 = arith.constant 0 : index
    %3 = vector.load %arg5[%c0, %c0_1] : memref<16x32xf32, #tpu.memory_space<vmem>>, vector<16x32xf32>
    %c0_2 = arith.constant 0 : index
    %c0_3 = arith.constant 0 : index
    %4 = vector.load %arg3[%c0_2, %c0_3] : memref<16x64xbf16, #tpu.memory_space<vmem>>, vector<16x64xbf16>
    %c0_4 = arith.constant 0 : index
    %c0_5 = arith.constant 0 : index
    %5 = vector.load %arg4[%c0_4, %c0_5] : memref<64x32xbf16, #tpu.memory_space<vmem>>, vector<64x32xbf16>
    %cst = arith.constant dense<0.000000e+00> : vector<16x32xf32>
    %6 = tpu.matmul %4, %5, %cst {dimension_numbers = #tpu.dot_dimension_numbers<[1], [0], [0], [1], [0, 0, 1, 1], [], []>} : vector<16x64xbf16>, vector<64x32xbf16>, vector<16x32xf32> -> vector<16x32xf32>
    %7 = arith.addf %3, %6 : vector<16x32xf32>
    %c0_6 = arith.constant 0 : index
    %c0_7 = arith.constant 0 : index
    %8 = vector.load %arg5[%c0_6, %c0_7] : memref<16x32xf32, #tpu.memory_space<vmem>>, vector<16x32xf32>
    tpu.vector_store %arg5[%c0_6, %c0_7], %7 {strides = array<i32>} : memref<16x32xf32, #tpu.memory_space<vmem>>, vector<16x32xf32>,
    return
  }
  func.func @transform_0(%arg0: i32, %arg1: i32, %arg2: i32) -> (i32, i32) {
    %c0_i32 = arith.constant 0 : i32
    return %arg0, %arg2 : i32, i32
  }
  func.func @transform_1(%arg0: i32, %arg1: i32, %arg2: i32) -> (i32, i32) {
    %c0_i32 = arith.constant 0 : i32
    return %arg2, %arg1 : i32, i32
  }
  func.func @transform_2(%arg0: i32, %arg1: i32, %arg2: i32) -> (i32, i32) {
    %c0_i32 = arith.constant 0 : i32
    return %arg0, %arg1 : i32, i32
  }
}

module attributes {stable_mosaic.version = 11 : i64} {
  func.func @_flash_attn_kernel(%arg0: i32, %arg1: i32, %arg2: i32, %arg3: memref<1x8x64xbf16, #tpu.memory_space<vmem>>, %arg4: memref<1x8x128xbf16, #tpu.memory_space<vmem>>, %arg5: memref<1x8x64xbf16, #tpu.memory_space<vmem>>, %arg6: memref<4x8x1xf32, #tpu.memory_space<vmem>>, %arg7: memref<4x8x1xf32, #tpu.memory_space<vmem>>, %arg8: memref<4x8x16xf32, #tpu.memory_space<vmem>>) attributes {dimension_semantics = [#tpu.dimension_semantics<parallel>, #tpu.dimension_semantics<parallel>, #tpu.dimension_semantics<arbitrary>], iteration_bounds = array<i64: 2, 1, 1>, scalar_prefetch = 0 : i64, scratch_operands = 3 : i64, tpu.core_type = #tpu.core_type<tc>, window_params = [{transform_indices = @transform_0, window_bounds = array<i64: 1, 8, 64>}, {transform_indices = @transform_1, window_bounds = array<i64: 1, 8, 128>}, {transform_indices = @transform_2, window_bounds = array<i64: 1, 8, 64>}]} {
    %c0_i32 = arith.constant 0 : i32
    %0 = arith.cmpi eq, %arg2, %c0_i32 : i32
    %1 = arith.extui %0 : i1 to i32
    %c0_i32_0 = arith.constant 0 : i32
    %2 = arith.cmpi ne, %1, %c0_i32_0 : i32
    scf.if %2 {
      %cst_92 = arith.constant -1.000000e+30 : f32
      %154 = vector.broadcast %cst_92 : f32 to vector<4x8x1xf32>
      %c0_93 = arith.constant 0 : index
      %c0_94 = arith.constant 0 : index
      %c0_95 = arith.constant 0 : index
      %155 = vector.load %arg6[%c0_93, %c0_94, %c0_95] : memref<4x8x1xf32, #tpu.memory_space<vmem>>, vector<4x8x1xf32>
      tpu.vector_store %arg6[%c0_93, %c0_94, %c0_95], %154 {strides = array<i32>} : memref<4x8x1xf32, #tpu.memory_space<vmem>>, vector<4x8x1xf32>,
      %cst_96 = arith.constant 0.000000e+00 : f32
      %156 = vector.broadcast %cst_96 : f32 to vector<4x8x1xf32>
      %c0_97 = arith.constant 0 : index
      %c0_98 = arith.constant 0 : index
      %c0_99 = arith.constant 0 : index
      %157 = vector.load %arg7[%c0_97, %c0_98, %c0_99] : memref<4x8x1xf32, #tpu.memory_space<vmem>>, vector<4x8x1xf32>
      tpu.vector_store %arg7[%c0_97, %c0_98, %c0_99], %156 {strides = array<i32>} : memref<4x8x1xf32, #tpu.memory_space<vmem>>, vector<4x8x1xf32>,
      %cst_100 = arith.constant 0.000000e+00 : f32
      %158 = vector.broadcast %cst_100 : f32 to vector<4x8x16xf32>
      %c0_101 = arith.constant 0 : index
      %c0_102 = arith.constant 0 : index
      %c0_103 = arith.constant 0 : index
      %159 = vector.load %arg8[%c0_101, %c0_102, %c0_103] : memref<4x8x16xf32, #tpu.memory_space<vmem>>, vector<4x8x16xf32>
      tpu.vector_store %arg8[%c0_101, %c0_102, %c0_103], %158 {strides = array<i32>} : memref<4x8x16xf32, #tpu.memory_space<vmem>>, vector<4x8x16xf32>,
    } else {
    }
    %c0 = arith.constant 0 : index
    %c0_1 = arith.constant 0 : index
    %c0_2 = arith.constant 0 : index
    %3 = vector.load %arg3[%c0, %c0_1, %c0_2] : memref<1x8x64xbf16, #tpu.memory_space<vmem>>, vector<1x8x64xbf16>
    %4 = vector.shape_cast %3 : vector<1x8x64xbf16> to vector<8x64xbf16>
    %c0_3 = arith.constant 0 : index
    %c0_4 = arith.constant 0 : index
    %c0_5 = arith.constant 0 : index
    %5 = vector.load %arg4[%c0_3, %c0_4, %c0_5] : memref<1x8x128xbf16, #tpu.memory_space<vmem>>, vector<1x8x128xbf16>
    %6 = vector.shape_cast %5 : vector<1x8x128xbf16> to vector<8x128xbf16>
    %7 = vector.extract_strided_slice %4 {offsets = [0, 0], sizes = [8, 16], strides = [1, 1]} : vector<8x64xbf16> to vector<8x16xbf16>
    %8 = vector.extract_strided_slice %6 {offsets = [0, 0], sizes = [8, 16], strides = [1, 1]} : vector<8x128xbf16> to vector<8x16xbf16>
    %9 = vector.extract_strided_slice %6 {offsets = [0, 16], sizes = [8, 16], strides = [1, 1]} : vector<8x128xbf16> to vector<8x16xbf16>
    %cst = arith.constant dense<0.000000e+00> : vector<8x8xf32>
    %10 = tpu.matmul %7, %8, %cst {dimension_numbers = #tpu.dot_dimension_numbers<[1], [1], [0], [0], [0, 0, 1, 0], [], []>} : vector<8x16xbf16>, vector<8x16xbf16>, vector<8x8xf32> -> vector<8x8xf32>
    %c0_6 = arith.constant 0 : index
    %c0_7 = arith.constant 0 : index
    %c0_8 = arith.constant 0 : index
    %11 = vector.load %arg6[%c0_6, %c0_7, %c0_8] : memref<4x8x1xf32, #tpu.memory_space<vmem>>, vector<1x8x1xf32>
    %12 = vector.shape_cast %11 : vector<1x8x1xf32> to vector<8x1xf32>
    %cst_9 = arith.constant dense<0xFF800000> : vector<8xf32>
    %13 = vector.multi_reduction <maximumf>, %10, %cst_9 [1] : vector<8x8xf32> to vector<8xf32>
    %14 = vector.shape_cast %13 : vector<8xf32> to vector<8x1xf32>
    %15 = arith.maximumf %12, %14 : vector<8x1xf32>
    %16 = arith.subf %12, %15 : vector<8x1xf32>
    %17 = math.exp %16 : vector<8x1xf32>
    %18 = vector.broadcast %15 : vector<8x1xf32> to vector<8x8xf32>
    %19 = arith.subf %10, %18 : vector<8x8xf32>
    %20 = math.exp %19 : vector<8x8xf32>
    %c0_10 = arith.constant 0 : index
    %c0_11 = arith.constant 0 : index
    %c0_12 = arith.constant 0 : index
    %21 = vector.load %arg7[%c0_10, %c0_11, %c0_12] : memref<4x8x1xf32, #tpu.memory_space<vmem>>, vector<1x8x1xf32>
    %22 = vector.shape_cast %21 : vector<1x8x1xf32> to vector<8x1xf32>
    %23 = arith.mulf %17, %22 : vector<8x1xf32>
    %cst_13 = arith.constant dense<0.000000e+00> : vector<8xf32>
    %24 = vector.multi_reduction <add>, %20, %cst_13 [1] : vector<8x8xf32> to vector<8xf32>
    %25 = vector.shape_cast %24 : vector<8xf32> to vector<8x1xf32>
    %26 = arith.addf %23, %25 : vector<8x1xf32>
    %c0_14 = arith.constant 0 : index
    %c0_15 = arith.constant 0 : index
    %c0_16 = arith.constant 0 : index
    %27 = vector.load %arg7[%c0_14, %c0_15, %c0_16] : memref<4x8x1xf32, #tpu.memory_space<vmem>>, vector<1x8x1xf32>
    %28 = vector.shape_cast %27 : vector<1x8x1xf32> to vector<8x1xf32>
    %29 = vector.shape_cast %26 : vector<8x1xf32> to vector<1x8x1xf32>
    tpu.vector_store %arg7[%c0_14, %c0_15, %c0_16], %29 {strides = array<i32>} : memref<4x8x1xf32, #tpu.memory_space<vmem>>, vector<1x8x1xf32>,
    %c0_17 = arith.constant 0 : index
    %c0_18 = arith.constant 0 : index
    %c0_19 = arith.constant 0 : index
    %30 = vector.load %arg8[%c0_17, %c0_18, %c0_19] : memref<4x8x16xf32, #tpu.memory_space<vmem>>, vector<1x8x16xf32>
    %31 = vector.shape_cast %30 : vector<1x8x16xf32> to vector<8x16xf32>
    %32 = vector.broadcast %17 : vector<8x1xf32> to vector<8x16xf32>
    %33 = arith.mulf %32, %31 : vector<8x16xf32>
    %34 = arith.truncf %20 : vector<8x8xf32> to vector<8x8xbf16>
    %cst_20 = arith.constant dense<0.000000e+00> : vector<8x16xf32>
    %35 = tpu.matmul %34, %9, %cst_20 {dimension_numbers = #tpu.dot_dimension_numbers<[1], [0], [0], [1], [0, 0, 1, 1], [], []>} : vector<8x8xbf16>, vector<8x16xbf16>, vector<8x16xf32> -> vector<8x16xf32>
    %36 = arith.addf %33, %35 : vector<8x16xf32>
    %c0_21 = arith.constant 0 : index
    %c0_22 = arith.constant 0 : index
    %c0_23 = arith.constant 0 : index
    %37 = vector.load %arg8[%c0_21, %c0_22, %c0_23] : memref<4x8x16xf32, #tpu.memory_space<vmem>>, vector<1x8x16xf32>
    %38 = vector.shape_cast %37 : vector<1x8x16xf32> to vector<8x16xf32>
    %39 = vector.shape_cast %36 : vector<8x16xf32> to vector<1x8x16xf32>
    tpu.vector_store %arg8[%c0_21, %c0_22, %c0_23], %39 {strides = array<i32>} : memref<4x8x16xf32, #tpu.memory_space<vmem>>, vector<1x8x16xf32>,
    %c0_24 = arith.constant 0 : index
    %c0_25 = arith.constant 0 : index
    %c0_26 = arith.constant 0 : index
    %40 = vector.load %arg6[%c0_24, %c0_25, %c0_26] : memref<4x8x1xf32, #tpu.memory_space<vmem>>, vector<1x8x1xf32>
    %41 = vector.shape_cast %40 : vector<1x8x1xf32> to vector<8x1xf32>
    %42 = vector.shape_cast %15 : vector<8x1xf32> to vector<1x8x1xf32>
    tpu.vector_store %arg6[%c0_24, %c0_25, %c0_26], %42 {strides = array<i32>} : memref<4x8x1xf32, #tpu.memory_space<vmem>>, vector<1x8x1xf32>,
    %43 = vector.extract_strided_slice %4 {offsets = [0, 16], sizes = [8, 16], strides = [1, 1]} : vector<8x64xbf16> to vector<8x16xbf16>
    %44 = vector.extract_strided_slice %6 {offsets = [0, 32], sizes = [8, 16], strides = [1, 1]} : vector<8x128xbf16> to vector<8x16xbf16>
    %45 = vector.extract_strided_slice %6 {offsets = [0, 48], sizes = [8, 16], strides = [1, 1]} : vector<8x128xbf16> to vector<8x16xbf16>
    %cst_27 = arith.constant dense<0.000000e+00> : vector<8x8xf32>
    %46 = tpu.matmul %43, %44, %cst_27 {dimension_numbers = #tpu.dot_dimension_numbers<[1], [1], [0], [0], [0, 0, 1, 0], [], []>} : vector<8x16xbf16>, vector<8x16xbf16>, vector<8x8xf32> -> vector<8x8xf32>
    %c1 = arith.constant 1 : index
    %c0_28 = arith.constant 0 : index
    %c0_29 = arith.constant 0 : index
    %47 = vector.load %arg6[%c1, %c0_28, %c0_29] : memref<4x8x1xf32, #tpu.memory_space<vmem>>, vector<1x8x1xf32>
    %48 = vector.shape_cast %47 : vector<1x8x1xf32> to vector<8x1xf32>
    %cst_30 = arith.constant dense<0xFF800000> : vector<8xf32>
    %49 = vector.multi_reduction <maximumf>, %46, %cst_30 [1] : vector<8x8xf32> to vector<8xf32>
    %50 = vector.shape_cast %49 : vector<8xf32> to vector<8x1xf32>
    %51 = arith.maximumf %48, %50 : vector<8x1xf32>
    %52 = arith.subf %48, %51 : vector<8x1xf32>
    %53 = math.exp %52 : vector<8x1xf32>
    %54 = vector.broadcast %51 : vector<8x1xf32> to vector<8x8xf32>
    %55 = arith.subf %46, %54 : vector<8x8xf32>
    %56 = math.exp %55 : vector<8x8xf32>
    %c1_31 = arith.constant 1 : index
    %c0_32 = arith.constant 0 : index
    %c0_33 = arith.constant 0 : index
    %57 = vector.load %arg7[%c1_31, %c0_32, %c0_33] : memref<4x8x1xf32, #tpu.memory_space<vmem>>, vector<1x8x1xf32>
    %58 = vector.shape_cast %57 : vector<1x8x1xf32> to vector<8x1xf32>
    %59 = arith.mulf %53, %58 : vector<8x1xf32>
    %cst_34 = arith.constant dense<0.000000e+00> : vector<8xf32>
    %60 = vector.multi_reduction <add>, %56, %cst_34 [1] : vector<8x8xf32> to vector<8xf32>
    %61 = vector.shape_cast %60 : vector<8xf32> to vector<8x1xf32>
    %62 = arith.addf %59, %61 : vector<8x1xf32>
    %c1_35 = arith.constant 1 : index
    %c0_36 = arith.constant 0 : index
    %c0_37 = arith.constant 0 : index
    %63 = vector.load %arg7[%c1_35, %c0_36, %c0_37] : memref<4x8x1xf32, #tpu.memory_space<vmem>>, vector<1x8x1xf32>
    %64 = vector.shape_cast %63 : vector<1x8x1xf32> to vector<8x1xf32>
    %65 = vector.shape_cast %62 : vector<8x1xf32> to vector<1x8x1xf32>
    tpu.vector_store %arg7[%c1_35, %c0_36, %c0_37], %65 {strides = array<i32>} : memref<4x8x1xf32, #tpu.memory_space<vmem>>, vector<1x8x1xf32>,
    %c1_38 = arith.constant 1 : index
    %c0_39 = arith.constant 0 : index
    %c0_40 = arith.constant 0 : index
    %66 = vector.load %arg8[%c1_38, %c0_39, %c0_40] : memref<4x8x16xf32, #tpu.memory_space<vmem>>, vector<1x8x16xf32>
    %67 = vector.shape_cast %66 : vector<1x8x16xf32> to vector<8x16xf32>
    %68 = vector.broadcast %53 : vector<8x1xf32> to vector<8x16xf32>
    %69 = arith.mulf %68, %67 : vector<8x16xf32>
    %70 = arith.truncf %56 : vector<8x8xf32> to vector<8x8xbf16>
    %cst_41 = arith.constant dense<0.000000e+00> : vector<8x16xf32>
    %71 = tpu.matmul %70, %45, %cst_41 {dimension_numbers = #tpu.dot_dimension_numbers<[1], [0], [0], [1], [0, 0, 1, 1], [], []>} : vector<8x8xbf16>, vector<8x16xbf16>, vector<8x16xf32> -> vector<8x16xf32>
    %72 = arith.addf %69, %71 : vector<8x16xf32>
    %c1_42 = arith.constant 1 : index
    %c0_43 = arith.constant 0 : index
    %c0_44 = arith.constant 0 : index
    %73 = vector.load %arg8[%c1_42, %c0_43, %c0_44] : memref<4x8x16xf32, #tpu.memory_space<vmem>>, vector<1x8x16xf32>
    %74 = vector.shape_cast %73 : vector<1x8x16xf32> to vector<8x16xf32>
    %75 = vector.shape_cast %72 : vector<8x16xf32> to vector<1x8x16xf32>
    tpu.vector_store %arg8[%c1_42, %c0_43, %c0_44], %75 {strides = array<i32>} : memref<4x8x16xf32, #tpu.memory_space<vmem>>, vector<1x8x16xf32>,
    %c1_45 = arith.constant 1 : index
    %c0_46 = arith.constant 0 : index
    %c0_47 = arith.constant 0 : index
    %76 = vector.load %arg6[%c1_45, %c0_46, %c0_47] : memref<4x8x1xf32, #tpu.memory_space<vmem>>, vector<1x8x1xf32>
    %77 = vector.shape_cast %76 : vector<1x8x1xf32> to vector<8x1xf32>
    %78 = vector.shape_cast %51 : vector<8x1xf32> to vector<1x8x1xf32>
    tpu.vector_store %arg6[%c1_45, %c0_46, %c0_47], %78 {strides = array<i32>} : memref<4x8x1xf32, #tpu.memory_space<vmem>>, vector<1x8x1xf32>,
    %79 = vector.extract_strided_slice %4 {offsets = [0, 32], sizes = [8, 16], strides = [1, 1]} : vector<8x64xbf16> to vector<8x16xbf16>
    %80 = vector.extract_strided_slice %6 {offsets = [0, 64], sizes = [8, 16], strides = [1, 1]} : vector<8x128xbf16> to vector<8x16xbf16>
    %81 = vector.extract_strided_slice %6 {offsets = [0, 80], sizes = [8, 16], strides = [1, 1]} : vector<8x128xbf16> to vector<8x16xbf16>
    %cst_48 = arith.constant dense<0.000000e+00> : vector<8x8xf32>
    %82 = tpu.matmul %79, %80, %cst_48 {dimension_numbers = #tpu.dot_dimension_numbers<[1], [1], [0], [0], [0, 0, 1, 0], [], []>} : vector<8x16xbf16>, vector<8x16xbf16>, vector<8x8xf32> -> vector<8x8xf32>
    %c2 = arith.constant 2 : index
    %c0_49 = arith.constant 0 : index
    %c0_50 = arith.constant 0 : index
    %83 = vector.load %arg6[%c2, %c0_49, %c0_50] : memref<4x8x1xf32, #tpu.memory_space<vmem>>, vector<1x8x1xf32>
    %84 = vector.shape_cast %83 : vector<1x8x1xf32> to vector<8x1xf32>
    %cst_51 = arith.constant dense<0xFF800000> : vector<8xf32>
    %85 = vector.multi_reduction <maximumf>, %82, %cst_51 [1] : vector<8x8xf32> to vector<8xf32>
    %86 = vector.shape_cast %85 : vector<8xf32> to vector<8x1xf32>
    %87 = arith.maximumf %84, %86 : vector<8x1xf32>
    %88 = arith.subf %84, %87 : vector<8x1xf32>
    %89 = math.exp %88 : vector<8x1xf32>
    %90 = vector.broadcast %87 : vector<8x1xf32> to vector<8x8xf32>
    %91 = arith.subf %82, %90 : vector<8x8xf32>
    %92 = math.exp %91 : vector<8x8xf32>
    %c2_52 = arith.constant 2 : index
    %c0_53 = arith.constant 0 : index
    %c0_54 = arith.constant 0 : index
    %93 = vector.load %arg7[%c2_52, %c0_53, %c0_54] : memref<4x8x1xf32, #tpu.memory_space<vmem>>, vector<1x8x1xf32>
    %94 = vector.shape_cast %93 : vector<1x8x1xf32> to vector<8x1xf32>
    %95 = arith.mulf %89, %94 : vector<8x1xf32>
    %cst_55 = arith.constant dense<0.000000e+00> : vector<8xf32>
    %96 = vector.multi_reduction <add>, %92, %cst_55 [1] : vector<8x8xf32> to vector<8xf32>
    %97 = vector.shape_cast %96 : vector<8xf32> to vector<8x1xf32>
    %98 = arith.addf %95, %97 : vector<8x1xf32>
    %c2_56 = arith.constant 2 : index
    %c0_57 = arith.constant 0 : index
    %c0_58 = arith.constant 0 : index
    %99 = vector.load %arg7[%c2_56, %c0_57, %c0_58] : memref<4x8x1xf32, #tpu.memory_space<vmem>>, vector<1x8x1xf32>
    %100 = vector.shape_cast %99 : vector<1x8x1xf32> to vector<8x1xf32>
    %101 = vector.shape_cast %98 : vector<8x1xf32> to vector<1x8x1xf32>
    tpu.vector_store %arg7[%c2_56, %c0_57, %c0_58], %101 {strides = array<i32>} : memref<4x8x1xf32, #tpu.memory_space<vmem>>, vector<1x8x1xf32>,
    %c2_59 = arith.constant 2 : index
    %c0_60 = arith.constant 0 : index
    %c0_61 = arith.constant 0 : index
    %102 = vector.load %arg8[%c2_59, %c0_60, %c0_61] : memref<4x8x16xf32, #tpu.memory_space<vmem>>, vector<1x8x16xf32>
    %103 = vector.shape_cast %102 : vector<1x8x16xf32> to vector<8x16xf32>
    %104 = vector.broadcast %89 : vector<8x1xf32> to vector<8x16xf32>
    %105 = arith.mulf %104, %103 : vector<8x16xf32>
    %106 = arith.truncf %92 : vector<8x8xf32> to vector<8x8xbf16>
    %cst_62 = arith.constant dense<0.000000e+00> : vector<8x16xf32>
    %107 = tpu.matmul %106, %81, %cst_62 {dimension_numbers = #tpu.dot_dimension_numbers<[1], [0], [0], [1], [0, 0, 1, 1], [], []>} : vector<8x8xbf16>, vector<8x16xbf16>, vector<8x16xf32> -> vector<8x16xf32>
    %108 = arith.addf %105, %107 : vector<8x16xf32>
    %c2_63 = arith.constant 2 : index
    %c0_64 = arith.constant 0 : index
    %c0_65 = arith.constant 0 : index
    %109 = vector.load %arg8[%c2_63, %c0_64, %c0_65] : memref<4x8x16xf32, #tpu.memory_space<vmem>>, vector<1x8x16xf32>
    %110 = vector.shape_cast %109 : vector<1x8x16xf32> to vector<8x16xf32>
    %111 = vector.shape_cast %108 : vector<8x16xf32> to vector<1x8x16xf32>
    tpu.vector_store %arg8[%c2_63, %c0_64, %c0_65], %111 {strides = array<i32>} : memref<4x8x16xf32, #tpu.memory_space<vmem>>, vector<1x8x16xf32>,
    %c2_66 = arith.constant 2 : index
    %c0_67 = arith.constant 0 : index
    %c0_68 = arith.constant 0 : index
    %112 = vector.load %arg6[%c2_66, %c0_67, %c0_68] : memref<4x8x1xf32, #tpu.memory_space<vmem>>, vector<1x8x1xf32>
    %113 = vector.shape_cast %112 : vector<1x8x1xf32> to vector<8x1xf32>
    %114 = vector.shape_cast %87 : vector<8x1xf32> to vector<1x8x1xf32>
    tpu.vector_store %arg6[%c2_66, %c0_67, %c0_68], %114 {strides = array<i32>} : memref<4x8x1xf32, #tpu.memory_space<vmem>>, vector<1x8x1xf32>,
    %115 = vector.extract_strided_slice %4 {offsets = [0, 48], sizes = [8, 16], strides = [1, 1]} : vector<8x64xbf16> to vector<8x16xbf16>
    %116 = vector.extract_strided_slice %6 {offsets = [0, 96], sizes = [8, 16], strides = [1, 1]} : vector<8x128xbf16> to vector<8x16xbf16>
    %117 = vector.extract_strided_slice %6 {offsets = [0, 112], sizes = [8, 16], strides = [1, 1]} : vector<8x128xbf16> to vector<8x16xbf16>
    %cst_69 = arith.constant dense<0.000000e+00> : vector<8x8xf32>
    %118 = tpu.matmul %115, %116, %cst_69 {dimension_numbers = #tpu.dot_dimension_numbers<[1], [1], [0], [0], [0, 0, 1, 0], [], []>} : vector<8x16xbf16>, vector<8x16xbf16>, vector<8x8xf32> -> vector<8x8xf32>
    %c3 = arith.constant 3 : index
    %c0_70 = arith.constant 0 : index
    %c0_71 = arith.constant 0 : index
    %119 = vector.load %arg6[%c3, %c0_70, %c0_71] : memref<4x8x1xf32, #tpu.memory_space<vmem>>, vector<1x8x1xf32>
    %120 = vector.shape_cast %119 : vector<1x8x1xf32> to vector<8x1xf32>
    %cst_72 = arith.constant dense<0xFF800000> : vector<8xf32>
    %121 = vector.multi_reduction <maximumf>, %118, %cst_72 [1] : vector<8x8xf32> to vector<8xf32>
    %122 = vector.shape_cast %121 : vector<8xf32> to vector<8x1xf32>
    %123 = arith.maximumf %120, %122 : vector<8x1xf32>
    %124 = arith.subf %120, %123 : vector<8x1xf32>
    %125 = math.exp %124 : vector<8x1xf32>
    %126 = vector.broadcast %123 : vector<8x1xf32> to vector<8x8xf32>
    %127 = arith.subf %118, %126 : vector<8x8xf32>
    %128 = math.exp %127 : vector<8x8xf32>
    %c3_73 = arith.constant 3 : index
    %c0_74 = arith.constant 0 : index
    %c0_75 = arith.constant 0 : index
    %129 = vector.load %arg7[%c3_73, %c0_74, %c0_75] : memref<4x8x1xf32, #tpu.memory_space<vmem>>, vector<1x8x1xf32>
    %130 = vector.shape_cast %129 : vector<1x8x1xf32> to vector<8x1xf32>
    %131 = arith.mulf %125, %130 : vector<8x1xf32>
    %cst_76 = arith.constant dense<0.000000e+00> : vector<8xf32>
    %132 = vector.multi_reduction <add>, %128, %cst_76 [1] : vector<8x8xf32> to vector<8xf32>
    %133 = vector.shape_cast %132 : vector<8xf32> to vector<8x1xf32>
    %134 = arith.addf %131, %133 : vector<8x1xf32>
    %c3_77 = arith.constant 3 : index
    %c0_78 = arith.constant 0 : index
    %c0_79 = arith.constant 0 : index
    %135 = vector.load %arg7[%c3_77, %c0_78, %c0_79] : memref<4x8x1xf32, #tpu.memory_space<vmem>>, vector<1x8x1xf32>
    %136 = vector.shape_cast %135 : vector<1x8x1xf32> to vector<8x1xf32>
    %137 = vector.shape_cast %134 : vector<8x1xf32> to vector<1x8x1xf32>
    tpu.vector_store %arg7[%c3_77, %c0_78, %c0_79], %137 {strides = array<i32>} : memref<4x8x1xf32, #tpu.memory_space<vmem>>, vector<1x8x1xf32>,
    %c3_80 = arith.constant 3 : index
    %c0_81 = arith.constant 0 : index
    %c0_82 = arith.constant 0 : index
    %138 = vector.load %arg8[%c3_80, %c0_81, %c0_82] : memref<4x8x16xf32, #tpu.memory_space<vmem>>, vector<1x8x16xf32>
    %139 = vector.shape_cast %138 : vector<1x8x16xf32> to vector<8x16xf32>
    %140 = vector.broadcast %125 : vector<8x1xf32> to vector<8x16xf32>
    %141 = arith.mulf %140, %139 : vector<8x16xf32>
    %142 = arith.truncf %128 : vector<8x8xf32> to vector<8x8xbf16>
    %cst_83 = arith.constant dense<0.000000e+00> : vector<8x16xf32>
    %143 = tpu.matmul %142, %117, %cst_83 {dimension_numbers = #tpu.dot_dimension_numbers<[1], [0], [0], [1], [0, 0, 1, 1], [], []>} : vector<8x8xbf16>, vector<8x16xbf16>, vector<8x16xf32> -> vector<8x16xf32>
    %144 = arith.addf %141, %143 : vector<8x16xf32>
    %c3_84 = arith.constant 3 : index
    %c0_85 = arith.constant 0 : index
    %c0_86 = arith.constant 0 : index
    %145 = vector.load %arg8[%c3_84, %c0_85, %c0_86] : memref<4x8x16xf32, #tpu.memory_space<vmem>>, vector<1x8x16xf32>
    %146 = vector.shape_cast %145 : vector<1x8x16xf32> to vector<8x16xf32>
    %147 = vector.shape_cast %144 : vector<8x16xf32> to vector<1x8x16xf32>
    tpu.vector_store %arg8[%c3_84, %c0_85, %c0_86], %147 {strides = array<i32>} : memref<4x8x16xf32, #tpu.memory_space<vmem>>, vector<1x8x16xf32>,
    %c3_87 = arith.constant 3 : index
    %c0_88 = arith.constant 0 : index
    %c0_89 = arith.constant 0 : index
    %148 = vector.load %arg6[%c3_87, %c0_88, %c0_89] : memref<4x8x1xf32, #tpu.memory_space<vmem>>, vector<1x8x1xf32>
    %149 = vector.shape_cast %148 : vector<1x8x1xf32> to vector<8x1xf32>
    %150 = vector.shape_cast %123 : vector<8x1xf32> to vector<1x8x1xf32>
    tpu.vector_store %arg6[%c3_87, %c0_88, %c0_89], %150 {strides = array<i32>} : memref<4x8x1xf32, #tpu.memory_space<vmem>>, vector<1x8x1xf32>,
    %c0_i32_90 = arith.constant 0 : i32
    %151 = arith.cmpi eq, %arg2, %c0_i32_90 : i32
    %152 = arith.extui %151 : i1 to i32
    %c0_i32_91 = arith.constant 0 : i32
    %153 = arith.cmpi ne, %152, %c0_i32_91 : i32
    scf.if %153 {
      %c0_92 = arith.constant 0 : index
      %c0_93 = arith.constant 0 : index
      %c0_94 = arith.constant 0 : index
      %154 = vector.load %arg8[%c0_92, %c0_93, %c0_94] : memref<4x8x16xf32, #tpu.memory_space<vmem>>, vector<1x8x16xf32>
      %155 = vector.shape_cast %154 : vector<1x8x16xf32> to vector<8x16xf32>
      %c0_95 = arith.constant 0 : index
      %c0_96 = arith.constant 0 : index
      %c0_97 = arith.constant 0 : index
      %156 = vector.load %arg7[%c0_95, %c0_96, %c0_97] : memref<4x8x1xf32, #tpu.memory_space<vmem>>, vector<1x8x1xf32>
      %157 = vector.shape_cast %156 : vector<1x8x1xf32> to vector<8x1xf32>
      %158 = tpu.reciprocal %157 : vector<8x1xf32> -> vector<8x1xf32>
      %159 = vector.broadcast %158 : vector<8x1xf32> to vector<8x16xf32>
      %160 = arith.mulf %155, %159 : vector<8x16xf32>
      %c1_98 = arith.constant 1 : index
      %c0_99 = arith.constant 0 : index
      %c0_100 = arith.constant 0 : index
      %161 = vector.load %arg8[%c1_98, %c0_99, %c0_100] : memref<4x8x16xf32, #tpu.memory_space<vmem>>, vector<1x8x16xf32>
      %162 = vector.shape_cast %161 : vector<1x8x16xf32> to vector<8x16xf32>
      %c1_101 = arith.constant 1 : index
      %c0_102 = arith.constant 0 : index
      %c0_103 = arith.constant 0 : index
      %163 = vector.load %arg7[%c1_101, %c0_102, %c0_103] : memref<4x8x1xf32, #tpu.memory_space<vmem>>, vector<1x8x1xf32>
      %164 = vector.shape_cast %163 : vector<1x8x1xf32> to vector<8x1xf32>
      %165 = tpu.reciprocal %164 : vector<8x1xf32> -> vector<8x1xf32>
      %166 = vector.broadcast %165 : vector<8x1xf32> to vector<8x16xf32>
      %167 = arith.mulf %162, %166 : vector<8x16xf32>
      %c2_104 = arith.constant 2 : index
      %c0_105 = arith.constant 0 : index
      %c0_106 = arith.constant 0 : index
      %168 = vector.load %arg8[%c2_104, %c0_105, %c0_106] : memref<4x8x16xf32, #tpu.memory_space<vmem>>, vector<1x8x16xf32>
      %169 = vector.shape_cast %168 : vector<1x8x16xf32> to vector<8x16xf32>
      %c2_107 = arith.constant 2 : index
      %c0_108 = arith.constant 0 : index
      %c0_109 = arith.constant 0 : index
      %170 = vector.load %arg7[%c2_107, %c0_108, %c0_109] : memref<4x8x1xf32, #tpu.memory_space<vmem>>, vector<1x8x1xf32>
      %171 = vector.shape_cast %170 : vector<1x8x1xf32> to vector<8x1xf32>
      %172 = tpu.reciprocal %171 : vector<8x1xf32> -> vector<8x1xf32>
      %173 = vector.broadcast %172 : vector<8x1xf32> to vector<8x16xf32>
      %174 = arith.mulf %169, %173 : vector<8x16xf32>
      %c3_110 = arith.constant 3 : index
      %c0_111 = arith.constant 0 : index
      %c0_112 = arith.constant 0 : index
      %175 = vector.load %arg8[%c3_110, %c0_111, %c0_112] : memref<4x8x16xf32, #tpu.memory_space<vmem>>, vector<1x8x16xf32>
      %176 = vector.shape_cast %175 : vector<1x8x16xf32> to vector<8x16xf32>
      %c3_113 = arith.constant 3 : index
      %c0_114 = arith.constant 0 : index
      %c0_115 = arith.constant 0 : index
      %177 = vector.load %arg7[%c3_113, %c0_114, %c0_115] : memref<4x8x1xf32, #tpu.memory_space<vmem>>, vector<1x8x1xf32>
      %178 = vector.shape_cast %177 : vector<1x8x1xf32> to vector<8x1xf32>
      %179 = tpu.reciprocal %178 : vector<8x1xf32> -> vector<8x1xf32>
      %180 = vector.broadcast %179 : vector<8x1xf32> to vector<8x16xf32>
      %181 = arith.mulf %176, %180 : vector<8x16xf32>
      %182 = tpu.concatenate %160, %167, %174, %181 in 1 : vector<8x16xf32>, vector<8x16xf32>, vector<8x16xf32>, vector<8x16xf32> -> vector<8x64xf32>
      %183 = arith.truncf %182 : vector<8x64xf32> to vector<8x64xbf16>
      %c0_116 = arith.constant 0 : index
      %c0_117 = arith.constant 0 : index
      %c0_118 = arith.constant 0 : index
      %184 = vector.load %arg5[%c0_116, %c0_117, %c0_118] : memref<1x8x64xbf16, #tpu.memory_space<vmem>>, vector<1x8x64xbf16>
      %185 = vector.shape_cast %184 : vector<1x8x64xbf16> to vector<8x64xbf16>
      %186 = vector.shape_cast %183 : vector<8x64xbf16> to vector<1x8x64xbf16>
      tpu.vector_store %arg5[%c0_116, %c0_117, %c0_118], %186 {strides = array<i32>} : memref<1x8x64xbf16, #tpu.memory_space<vmem>>, vector<1x8x64xbf16>,
    } else {
    }
    return
  }
  func.func @transform_0(%arg0: i32, %arg1: i32, %arg2: i32) -> (i32, i32, i32) {
    %c0_i32 = arith.constant 0 : i32
    %c0_i32_0 = arith.constant 0 : i32
    return %arg0, %arg1, %c0_i32 : i32, i32, i32
  }
  func.func @transform_1(%arg0: i32, %arg1: i32, %arg2: i32) -> (i32, i32, i32) {
    %c0_i32 = arith.constant 0 : i32
    %c0_i32_0 = arith.constant 0 : i32
    return %arg0, %arg2, %c0_i32 : i32, i32, i32
  }
  func.func @transform_2(%arg0: i32, %arg1: i32, %arg2: i32) -> (i32, i32, i32) {
    %c0_i32 = arith.constant 0 : i32
    %c0_i32_0 = arith.constant 0 : i32
    return %arg0, %arg1, %c0_i32 : i32, i32, i32
  }
}

</mosaic_0001>

<bundles_post_ra>
// kernel: _lambda_.7
= control target key start
LH: loop header
LB: loop body
LE: loop exit
PB: predicated region body
PF: predicated region fallthrough
CT: control target
= control target key end

     0   :  { %v182_v1 = vmov 0.0   ;;  %vm183_vm0 = vmmov 0   ;;  %vm17_vm1 = vcmask 261120   ;;  %s224_s0 = inlined_call_operand.vmem [shape: bf16[16,64], index: 0, kind: input, shape index: {}]   ;;  %s225_s1 = inlined_call_operand.vmem [shape: bf16[64,32], index: 1, kind: input, shape index: {}]   ;;  %s226_s2 = inlined_call_operand.hbm [shape: f32[16,32], index: 2, kind: output, shape index: {}]  }
   0x1   :  { %v155_v0 = vld [vmem:[%s225_s1 + $0x18] sm:$0xff]   ;;  %138 = vmatprep.subr.bf16.mxu0 %v182_v1  ;;  %v156_v2 = vld [vmem:[%s225_s1 + $0x10] sm:$0xff]   ;;  %146 = vmatprep.mubr.msk.bf16.mxu0 %vm183_vm0, %v182_v1  ;;  %18 = vst.msk [vmem:[#allocation2] sm:$0xff] %vm17_vm1, %v182_v1  ;;  %19 = vst.msk [vmem:[#allocation2 + $0x8] sm:$0xff] %vm17_vm1, %v182_v1 }
   0x2   :  { %139 = vmatpush3.bf16.msra.mxu0 %v155_v0 }
   0x3   :  { %140 = vmatprep.subr.bf16.mxu0 %v182_v1 }
   0x4   :  { %7 = vsyncpa [#allocation3], 0  ;;  %v157_v3 = vld [vmem:[%s225_s1 + $0x8] sm:$0xff]   ;;  %v158_v4 = vld [vmem:[%s225_s1] sm:$0xff]   ;;  %vm61_vm2 = vcmask 523264   ;;  %s184_s19 = smov [#allocation2]  }
   0x5   :  { %v159_v5 = vld [vmem:[%s224_s0] sm:$0xff]   ;;  %s116_s20 = sshll.u32 %s184_s19, 4  ;;  %s117_s20 = int_to_ptr.vmem [resolvable:$true] %s116_s20 }
   0x6   :  { %141 = vmatpush3.bf16.msra.mxu0 %v156_v2  ;;  %s160_s1 = scalar_lea.vmem %s117_s20, 256  ;;  %p165_p1 = scmp.lt.s32.totalorder %s117_s20, %s117_s20 }
   0x7   :  { %142 = vmatprep.subr.bf16.mxu0 %v182_v1  ;;  %p161_p0 = scmp.ne.s32.totalorder %s117_s20, %s160_s1  ;;  %p166_p2 = scmp.lt.s32.totalorder %s160_s1, %s160_s1 }
   0x8   :  { %v20_v6 = vld [vmem:[#allocation2] sm:$0xff]  ;;  %v21_v10 = vld [vmem:[#allocation2 + $0x8] sm:$0xff] }
   0x9   :  { %p167_p3 = por %p166_p2, %p165_p1 }
   0xa   :  { %143 = vmatpush3.bf16.msra.mxu0 %v157_v3 }
   0xb   :  { %144 = vmatprep.subr.bf16.mxu0 %v182_v1  ;;  %p168_p4 = pnand %p167_p3, %p161_p0 }
   0xe   :  { %145 = vmatpush3.bf16.msra.mxu0 %v158_v4 }
  0x11   :  { %147 = vmatmul.mubr.msk.bf16.vlgmr.msra.gmra.mxu0 %vm61_vm2, %v159_v5 }
  0xd1   :  { %v99_v7 = vpop.f32.mrf.mxu0 }
  0xd2   :  { %v106_v8 = vadd.f32 %v99_v7, %v20_v6 }
  0xd3   :  { %v148_v9 = vpop.f32.mrf.mxu0 }
  0xd4   :  { %109 = vst.msk [vmem:[#allocation2] sm:$0xff] %vm17_vm1, %v106_v8 }
  0xd5   :  { %v102_v11 = vpop.f32.mrf.mxu0 }
  0xd6   :  { %v107_v12 = vadd.f32 %v102_v11, %v21_v10 }
  0xd7   :  { %v149_v13 = vpop.f32.mrf.mxu0 }
  0xd8   :  { %110 = vst.msk [vmem:[#allocation2 + $0x8] sm:$0xff] %vm17_vm1, %v107_v12 }
  0xd9   :  { %171 = shalt.err (!%p168_p4)
}
  0xda   :  { %s185_s0 = smov 128   ;;  %s186_s21 = smov 8  }
  0xdb   :  { %122 = dma.vmem_to_hbm [thread:$0]  %s117_s20, 256, %s226_s2, [#allocation3], %s185_s0, %s185_s0, %s186_s21  }
  0xdc   :  { %180 = dma.done.wait [#allocation3], 256  }
  0xdd   :  { %181 = vsyncadd [#allocation3], 4294967040 }
  0xde   :  { %126 = vsyncpa [#allocation3], 1 }

// kernel: _lambda_.4
= control target key start
LH: loop header
LB: loop body
LE: loop exit
PB: predicated region body
PF: predicated region fallthrough
CT: control target
= control target key end

     0   :  { %vm16_vm0 = vcmask 523264   ;;  %v138_v0 = vmov 0.0   ;;  %vm139_vm1 = vmmov 0   ;;  %vm44_vm2 = vcmask 261120   ;;  %s174_s1 = inlined_call_operand.vmem [shape: bf16[32,64], index: 1, kind: input, shape index: {}]   ;;  %s175_s0 = inlined_call_operand.vmem [shape: bf16[16,32], index: 0, kind: input, shape index: {}]   ;;  %s176_s2 = inlined_call_operand.vmem [shape: bf16[16,64], index: 2, kind: output, shape index: {}]  }
   0x1   :  { %125 = vmatprep.subr.bf16.mxu0 %v138_v0  ;;  %v135_v1 = vld [vmem:[%s174_s1 + $0x8] sm:$0xff]   ;;  %129 = vmatprep.mubr.msk.bf16.mxu0 %vm139_vm1, %v138_v0  ;;  %17 = vst.msk [vmem:[#allocation2] sm:$0xff] %vm16_vm0, %v138_v0  ;;  %18 = vst.msk [vmem:[#allocation2 + $0x8] sm:$0xff] %vm16_vm0, %v138_v0  ;;  %v136_v2 = vld [vmem:[%s174_s1] sm:$0xff]   ;;  %vm107_vm3 = vcmask 519168  }
   0x2   :  { %126 = vmatpush3.bf16.msra.mxu0 %v135_v1  ;;  %v137_v3 = vld [vmem:[%s175_s0] sm:$0xff]  }
   0x3   :  { %127 = vmatprep.subr.bf16.mxu0 %v138_v0 }
   0x6   :  { %128 = vmatpush3.bf16.msra.mxu0 %v136_v2 }
   0x8   :  { %v19_v4 = vld [vmem:[#allocation2] sm:$0xff]  ;;  %v20_v8 = vld [vmem:[#allocation2 + $0x8] sm:$0xff] }
   0x9   :  { %130 = vmatmul.mubr.msk.bf16.vlgmr.msra.gmra.mxu0 %vm44_vm2, %v137_v3 }
  0xc9   :  { %v82_v5 = vpop.f32.mrf.mxu0 }
  0xca   :  { %v89_v6 = vadd.f32 %v82_v5, %v19_v4 }
  0xcb   :  { %v131_v7 = vpop.f32.mrf.mxu0 }
  0xcc   :  { %92 = vst.msk [vmem:[#allocation2] sm:$0xff] %vm16_vm0, %v89_v6 }
  0xcd   :  { %v85_v9 = vpop.f32.mrf.mxu0 }
  0xce   :  { %v90_v10 = vadd.f32 %v85_v9, %v20_v8 }
  0xcf   :  { %v132_v11 = vpop.f32.mrf.mxu0 }
  0xd0   :  { %93 = vst.msk [vmem:[#allocation2 + $0x8] sm:$0xff] %vm16_vm0, %v90_v10 }
  0xd3   :  { %v97_v12 = vld [vmem:[#allocation2] sm:$0xff] }
  0xd4   :  { %v120_v13 = vpack.c.bf16 %v97_v12, %v97_v12 }
  0xd6   :  { %108 = vst.msk [vmem:[%s176_s2] sm:$0xf] %vm107_vm3, %v120_v13 }
  0xd7   :  { %v98_v14 = vld [vmem:[#allocation2 + $0x8] sm:$0xff] }
  0xd8   :  { %v121_v15 = vpack.c.bf16 %v98_v14, %v98_v14 }
  0xda   :  { %109 = vst.msk [vmem:[%s176_s2 + $0x4] sm:$0xf] %vm107_vm3, %v121_v15 }

// kernel: _lambda_.5
= control target key start
LH: loop header
LB: loop body
LE: loop exit
PB: predicated region body
PF: predicated region fallthrough
CT: control target
= control target key end

     0   :  { %v140_v0 = vmov 0.0   ;;  %vm141_vm0 = vmmov 0   ;;  %vm43_vm1 = vcmask 261120   ;;  %s169_s1 = inlined_call_operand.vmem [shape: bf16[32,128], index: 1, kind: input, shape index: {}]   ;;  %s170_s0 = inlined_call_operand.vmem [shape: bf16[16,32], index: 0, kind: input, shape index: {}]   ;;  %s171_s2 = inlined_call_operand.vmem [shape: bf16[16,128], index: 2, kind: output, shape index: {}]  }
   0x1   :  { %127 = vmatprep.subr.bf16.mxu0 %v140_v0  ;;  %v137_v1 = vld [vmem:[%s169_s1 + $0x8] sm:$0xff]   ;;  %131 = vmatprep.mubr.msk.bf16.mxu0 %vm141_vm0, %v140_v0  ;;  %v138_v2 = vld [vmem:[%s169_s1] sm:$0xff]  }
   0x2   :  { %128 = vmatpush3.bf16.msra.mxu0 %v137_v1  ;;  %v139_v3 = vld [vmem:[%s170_s0] sm:$0xff]  }
   0x3   :  { %129 = vmatprep.subr.bf16.mxu0 %v140_v0 }
   0x6   :  { %130 = vmatpush3.bf16.msra.mxu0 %v138_v2 }
   0x9   :  { %132 = vmatmul.mubr.msk.bf16.vlgmr.msra.gmra.mxu0 %vm43_vm1, %v139_v3 }
  0xc9   :  { %v81_v4 = vpop.f32.mrf.mxu0 }
  0xcb   :  { %v133_v5 = vpop.f32.mrf.mxu0 }
  0xcd   :  { %v84_v6 = vpop.f32.mrf.mxu0 }
  0xce   :  { %v122_v7 = vpack.c.bf16 %v84_v6, %v81_v4 }
  0xcf   :  { %v134_v8 = vpop.f32.mrf.mxu0 }
  0xd0   :  { %123 = vst [vmem:[%s171_s2] sm:$0xff] %v122_v7  }

// kernel: _lambda_.6
= control target key start
LH: loop header
LB: loop body
LE: loop exit
PB: predicated region body
PF: predicated region fallthrough
CT: control target
= control target key end

     0   :  { %s1116_s9 = smov 0   ;;  %s1118_s10 = smov 0   ;;  %s1287_s0 = inlined_call_operand.vmem [shape: bf16[2,8,64], index: 0, kind: input, shape index: {}]   ;;  %s1288_s1 = inlined_call_operand.vmem [shape: bf16[2,8,128], index: 1, kind: input, shape index: {}]   ;;  %s1289_s2 = inlined_call_operand.vmem [shape: bf16[2,8,64], index: 2, kind: output, shape index: {}]  }
   0x1   :  { %s1120_s11 = smov 0  }
   0x2 LB: > { %s31_s12 = sadd.s32 1, %s1084_s10  ;;  %p924_p0 = scmp.ge.s32.totalorder %s1088_s11, 1  ;;  %s1088_s11 = sphi %s1120_s11, %s12_s11   ;;  %s1084_s10 = sphi %s1118_s10, %s1291_s10   ;;  %s1080_s9 = sphi %s1116_s9, %s1290_s9  }
   0x3   : > { %p33_p1 = scmp.ge.s32.totalorder %s31_s12, 2  ;;  %p151_p2 = scmp.lt.s32.totalorder %s1088_s11, 3 }
   0x5   : > { %s1293_s12 = smov (%p33_p1, %s31_s12), 0  ;;  %p152_p3 = pnand %p924_p0, %p151_p2 }
   0x6   : > { %p184_p4 = scmp.lt.s32.totalorder (!%p152_p3), %s1080_s9, 1  ;;  %s1094_s20 = smov (!%p152_p3), 112  }
   0x7   : > { %155 = sbr.rel (%p152_p3) target bundleno = 1410 (0x582), region = 28  ;;  %s1095_s21 = smov (!%p152_p3), 96  }
   0x8   : > { %s1096_s22 = smov (!%p152_p3), 64   ;;  %s1097_s23 = smov (!%p152_p3), 32  }
   0x9   : > { %s1098_s24 = smov (!%p152_p3), 80   ;;  %s1099_s25 = smov (!%p152_p3), 48  }
   0xa   : > { %s1100_s26 = smov (!%p152_p3), 16  }
   0xc   : > { %vm219_vm0 = vcmask 130048   ;;  %v1090_v0 = vmov 0.0   ;;  %vm1091_vm1 = vmmov 0   ;;  %s1295_s9 = smov (!%p184_p4, %s1080_s9), 1  ;;  %vm210_vm2 = vcmask 7168  }
   0xd   : > { %956 = vmatprep.subr.bf16.mxu0 %v1090_v0  ;;  %220 = vst.msk [vmem:[#allocation4] sm:$0xff] %vm219_vm0, %v1090_v0  ;;  %221 = vst.msk [vmem:[#allocation4 + $0x8] sm:$0xff] %vm219_vm0, %v1090_v0  ;;  %958 = vmatprep.mubr.msk.bf16.mxu0 %vm1091_vm1, %v1090_v0  ;;  %s1148_s13 = sshll.u32 %s1295_s9, 2  ;;  %v1092_v4 = vmov -1e+30   ;;  %vm274_vm3 = vcmask 64512  }
   0xe   : > { %222 = vst.msk [vmem:[#allocation4 + $0x10] sm:$0xff] %vm219_vm0, %v1090_v0  ;;  %223 = vst.msk [vmem:[#allocation4 + $0x18] sm:$0xff] %vm219_vm0, %v1090_v0  ;;  %962 = vmatprep.subr.bf16.mxu1 %v1090_v0  ;;  %964 = vmatprep.mubr.msk.bf16.mxu1 %vm1091_vm1, %v1090_v0  ;;  %s197_s16 = scalar_lea.vmem %s1288_s1, %s1148_s13  ;;  %s190_s19 = scalar_lea.vmem %s1287_s0, %s1148_s13  ;;  %v1093_v10 = vmov 0   ;;  %vm314_vm4 = vcmask 1043456   ;;  %vm821_vm5 = vcmask 261120   ;;  %vm823_vm6 = vcmask 392192  }
   0xf   : > { %v225_v1 = vld [vmem:[%s197_s16] sm:$0xf]  ;;  %211 = vst.msk [vmem:[#allocation2] sm:$0xff] %vm210_vm2, %v1092_v4  ;;  %212 = vst.msk [vmem:[#allocation2 + $0x8] sm:$0xff] %vm210_vm2, %v1092_v4  ;;  %1039 = vset.pattern.permute.xlu0 %v1093_v10  ;;  %1040 = vset.pattern.permute.xlu1 %v1093_v10  ;;  %s204_s29 = scalar_lea.vmem %s1289_s2, %s1148_s13  ;;  %vm826_vm7 = vcmask 519168  }
  0x10   : > { %v231_v2 = vsel %vm219_vm0, %v225_v1, 0  ;;  %v224_v3 = vld [vmem:[%s190_s19] sm:$0xf]  ;;  %213 = vst.msk [vmem:[#allocation2 + $0x10] sm:$0xff] %vm210_vm2, %v1092_v4  ;;  %214 = vst.msk [vmem:[#allocation2 + $0x18] sm:$0xff] %vm210_vm2, %v1092_v4  ;;  %v1176_v11 = vcombine.low %v225_v1, %v225_v1 }
  0x11   : > { %957 = vmatpush3.bf16.xpose.msra.mxu0 %v231_v2  ;;  %215 = vst.msk [vmem:[#allocation3] sm:$0xff] %vm210_vm2, %v1090_v0  ;;  %216 = vst.msk [vmem:[#allocation3 + $0x8] sm:$0xff] %vm210_vm2, %v1090_v0  ;;  %v931_v12 = vcombine.low %v224_v3, %v224_v3 }
  0x12   : > { %974 = vmatprep.subr.bf16.mxu0 %v1090_v0  ;;  %217 = vst.msk [vmem:[#allocation3 + $0x10] sm:$0xff] %vm210_vm2, %v1090_v0  ;;  %218 = vst.msk [vmem:[#allocation3 + $0x18] sm:$0xff] %vm210_vm2, %v1090_v0  ;;  %309 = vrot.lane.b32.xlu1 %v1176_v11, %s1094_s20 }
  0x16   : > { %366 = vrot.lane.b32.xlu1 %v1176_v11, %s1095_s21  ;;  %v1184_v13 = vld [vmem:[#allocation2] sm:$0xff]  ;;  %v1220_v52 = vld [vmem:[#allocation2 + $0x8] sm:$0xff] }
  0x17   : > { %v550_v56 = vld [vmem:[#allocation2 + $0x10] sm:$0xff]  ;;  %v685_v60 = vld [vmem:[#allocation2 + $0x18] sm:$0xff] }
  0x18   : > { %959 = vmatmul.mubr.msk.bf16.vlgmr.msra.gmra.mxu0 %vm219_vm0, %v224_v3 }
  0x19   : > { %976 = vmatprep.mubr.msk.bf16.mxu0 %vm1091_vm1, %v1090_v0 }
  0x1a   : > { %364 = vrot.lane.b32.xlu1 %v931_v12, %s1094_s20 }
  0x1e   : > { %501 = vrot.lane.b32.xlu1 %v1176_v11, %s1096_s22 }
  0x22   : > { %499 = vrot.lane.b32.xlu1 %v931_v12, %s1095_s21 }
  0x26   : > { %636 = vrot.lane.b32.xlu1 %v1176_v11, %s1097_s23 }
  0x2a   : > { %634 = vrot.lane.b32.xlu1 %v931_v12, %s1098_s24 }
  0x84   : > { %v310_v17 = vpop.permute.xlu1 %309 }
  0x85   : > { %v316_v18 = vsel %vm314_vm4, %v310_v17, 0 }
  0x86   : > { %963 = vmatpush3.bf16.msra.mxu1 %v316_v18 }
  0x87   : > { %968 = vmatprep.subr.bf16.mxu1 %v1090_v0 }
  0x88   : > { %v367_v22 = vpop.permute.xlu1 %366 }
  0x89   : > { %v372_v25 = vsel %vm219_vm0, %v367_v22, 0 }
  0x8c   : > { %v365_v23 = vpop.permute.xlu1 %364 }
  0x90   : > { %v502_v27 = vpop.permute.xlu1 %501 }
  0x91   : > { %v507_v29 = vsel %vm219_vm0, %v502_v27, 0 }
  0x94   : > { %v500_v28 = vpop.permute.xlu1 %499 }
  0x98   : > { %v637_v30 = vpop.permute.xlu1 %636 }
  0x99   : > { %v642_v31 = vsel %vm219_vm0, %v637_v30, 0 }
  0x9c   : > { %v635_v32 = vpop.permute.xlu1 %634 }
  0xd8   : > { %v267_v5 = vpop.f32.mrf.mxu0 }
  0xd9   : > { %v275_v6 = vsel %vm274_vm3, %v267_v5, -inf }
  0xda   : > { %276 = vmax.xlane.f32.xlu0 %v275_v6  ;;  %v960_v7 = vpop.f32.mrf.mxu0 }
  0xdc   : > { %v270_v8 = vpop.f32.mrf.mxu0 }
  0xde   : > { %v961_v9 = vpop.f32.mrf.mxu0 }
 0x163   : > { %v277_v14 = vpop.xlane.xlu0 %276 }
 0x164   : > { %v1187_v15 = vmax.f32 %v1184_v13, %v277_v14 }
 0x166   : > { %v279_v16 = vsub.f32 %v1184_v13, %v1187_v15  ;;  %360 = vst.msk [vmem:[#allocation2] sm:$0xff] %vm210_vm2, %v1187_v15  ;;  %284 = vperm.xlu0 %1039, %v1187_v15  }
 0x168   : > { %v280_v12 = vmul.f32 1.442695, %v279_v16 }
 0x1e1   : > { %v285_v19 = vpop.permute.xlu0 %284 }
 0x1e2   : > { %v287_v20 = vsub.f32 %v267_v5, %v285_v19 }
 0x1e4   : > { %v288_v21 = vmul.f32 1.442695, %v287_v20 }
 0x1e6   : > { %1042 = vpow2.f32 %v288_v21 }
 0x1f3   : > { %v1196_v24 = vpop.eup %1042 }
 0x1f4   : > { %v305_v26 = vpack.c.bf16 %v1196_v24, %v1196_v24  ;;  %v292_v1 = vsel %vm274_vm3, %v1196_v24, 0.0 }
 0x1f6   : > { %965 = vmatmul.mubr.msk.bf16.vlgmr.msra.gmra.mxu1 %vm274_vm3, %v305_v26 }
 0x1f7   : > { %969 = vmatpush3.bf16.xpose.msra.mxu1 %v372_v25  ;;  %970 = vmatprep.mubr.msk.bf16.mxu1 %vm1091_vm1, %v1090_v0 }
 0x1f8   : > { %980 = vmatprep.subr.bf16.mxu1 %v1090_v0 }
 0x1fe   : > { %971 = vmatmul.mubr.msk.bf16.vlgmr.msra.gmra.mxu1 %vm219_vm0, %v365_v23 }
 0x1ff   : > { %981 = vmatpush3.bf16.xpose.msra.mxu1 %v507_v29  ;;  %982 = vmatprep.mubr.msk.bf16.mxu1 %vm1091_vm1, %v1090_v0 }
 0x200   : > { %992 = vmatprep.subr.bf16.mxu1 %v1090_v0 }
 0x206   : > { %983 = vmatmul.mubr.msk.bf16.vlgmr.msra.gmra.mxu1 %vm219_vm0, %v500_v28 }
 0x207   : > { %993 = vmatpush3.bf16.xpose.msra.mxu1 %v642_v31  ;;  %994 = vmatprep.mubr.msk.bf16.mxu1 %vm1091_vm1, %v1090_v0 }
 0x20e   : > { %995 = vmatmul.mubr.msk.bf16.vlgmr.msra.gmra.mxu1 %vm219_vm0, %v635_v32 }
 0x2b6   : > { %v1215_v33 = vpop.f32.mrf.mxu1 }
 0x2b8   : > { %v966_v34 = vpop.f32.mrf.mxu1 }
 0x2b9   : > { %v290_v34 = vld [vmem:[#allocation3] sm:$0xff] }
 0x2ba   : > { %v355_v35 = vpop.f32.mrf.mxu1 }
 0x2bc   : > { %v967_v36 = vpop.f32.mrf.mxu1 }
 0x2be   : > { %v408_v37 = vpop.f32.mrf.mxu1 }
 0x2bf   : > { %v416_v38 = vsel %vm274_vm3, %v408_v37, -inf }
 0x2c0   : > { %417 = vmax.xlane.f32.xlu1 %v416_v38  ;;  %v972_v39 = vpop.f32.mrf.mxu1 }
 0x2c2   : > { %v411_v40 = vpop.f32.mrf.mxu1 }
 0x2c3   : > { %v432_v40 = vld [vmem:[#allocation3 + $0x8] sm:$0xff] }
 0x2c4   : > { %v973_v41 = vpop.f32.mrf.mxu1 }
 0x2c6   : > { %v543_v42 = vpop.f32.mrf.mxu1 }
 0x2c7   : > { %v551_v43 = vsel %vm274_vm3, %v543_v42, -inf }
 0x2c8   : > { %552 = vmax.xlane.f32.xlu0 %v551_v43  ;;  %v984_v44 = vpop.f32.mrf.mxu1 }
 0x2c9   : > { %v298_v44 = vld [vmem:[#allocation4] sm:$0xff] }
 0x2ca   : > { %v546_v45 = vpop.f32.mrf.mxu1 }
 0x2cc   : > { %v985_v46 = vpop.f32.mrf.mxu1 }
 0x2cd   : > { %v567_v46 = vld [vmem:[#allocation3 + $0x10] sm:$0xff] }
 0x2ce   : > { %v678_v47 = vpop.f32.mrf.mxu1 }
 0x2cf   : > { %v686_v48 = vsel %vm274_vm3, %v678_v47, -inf }
 0x2d0   : > { %687 = vmax.xlane.f32.xlu1 %v686_v48  ;;  %v996_v49 = vpop.f32.mrf.mxu1 }
 0x2d2   : > { %v681_v50 = vpop.f32.mrf.mxu1 }
 0x2d4   : > { %v997_v51 = vpop.f32.mrf.mxu1 }
 0x349   : > { %v418_v53 = vpop.xlane.xlu1 %417 }
 0x34a   : > { %v1223_v54 = vmax.f32 %v1220_v52, %v418_v53  ;;  %v702_v53 = vld [vmem:[#allocation3 + $0x18] sm:$0xff] }
 0x34c   : > { %v420_v55 = vsub.f32 %v1220_v52, %v1223_v54  ;;  %498 = vst.msk [vmem:[#allocation2 + $0x8] sm:$0xff] %vm210_vm2, %v1223_v54  ;;  %425 = vperm.xlu1 %1040, %v1223_v54  }
 0x34e   : > { %v421_v31 = vmul.f32 1.442695, %v420_v55 }
 0x351   : > { %v553_v57 = vpop.xlane.xlu0 %552 }
 0x352   : > { %v554_v58 = vmax.f32 %v550_v56, %v553_v57 }
 0x354   : > { %v555_v59 = vsub.f32 %v550_v56, %v554_v58  ;;  %633 = vst.msk [vmem:[#allocation2 + $0x10] sm:$0xff] %vm210_vm2, %v554_v58  ;;  %560 = vperm.xlu0 %1039, %v554_v58  }
 0x356   : > { %v556_v19 = vmul.f32 1.442695, %v555_v59 }
 0x359   : > { %v688_v61 = vpop.xlane.xlu1 %687 }
 0x35a   : > { %v689_v62 = vmax.f32 %v685_v60, %v688_v61  ;;  %v440_v61 = vld [vmem:[#allocation4 + $0x8] sm:$0xff] }
 0x35c   : > { %v690_v63 = vsub.f32 %v685_v60, %v689_v62  ;;  %768 = vst.msk [vmem:[#allocation2 + $0x18] sm:$0xff] %vm210_vm2, %v689_v62  ;;  %695 = vperm.xlu1 %1040, %v689_v62  }
 0x35e   : > { %v691_v16 = vmul.f32 1.442695, %v690_v63 }
 0x360   : > { %448 = vrot.lane.b32.xlu1 %v1176_v11, %s1098_s24 }
 0x364   : > { %583 = vrot.lane.b32.xlu1 %v1176_v11, %s1099_s25 }
 0x368   : > { %718 = vrot.lane.b32.xlu1 %v1176_v11, %s1100_s26 }
 0x373   : > { %293 = vadd.xlane.f32.xlu0 %v292_v1 }
 0x3c7   : > { %v426_v2 = vpop.permute.xlu1 %425 }
 0x3c8   : > { %v428_v3 = vsub.f32 %v408_v37, %v426_v2 }
 0x3ca   : > { %v429_v4 = vmul.f32 1.442695, %v428_v3 }
 0x3cc   : > { %1044 = vpow2.f32 %v429_v4  ;;  %v575_v4 = vld [vmem:[#allocation4 + $0x10] sm:$0xff] }
 0x3cf   : > { %v561_v5 = vpop.permute.xlu0 %560 }
 0x3d0   : > { %v563_v6 = vsub.f32 %v543_v42, %v561_v5 }
 0x3d2   : > { %v564_v7 = vmul.f32 1.442695, %v563_v6 }
 0x3d4   : > { %1046 = vpow2.f32 %v564_v7 }
 0x3d7   : > { %v696_v8 = vpop.permute.xlu1 %695 }
 0x3d8   : > { %v698_v9 = vsub.f32 %v678_v47, %v696_v8 }
 0x3d9   : > { %v1045_v10 = vpop.eup %1044 }
 0x3da   : > { %v699_v11 = vmul.f32 1.442695, %v698_v9  ;;  %v434_v14 = vsel %vm274_vm3, %v1045_v10, 0.0  ;;  %v447_v20 = vpack.c.bf16 %v1045_v10, %v1045_v10 }
 0x3db   : > { %435 = vadd.xlane.f32.xlu1 %v434_v14  ;;  %v449_v17 = vpop.permute.xlu1 %448 }
 0x3dc   : > { %1048 = vpow2.f32 %v699_v11  ;;  %v454_v18 = vsel %vm314_vm4, %v449_v17, 0  ;;  %v710_v11 = vld [vmem:[#allocation4 + $0x18] sm:$0xff] }
 0x3dd   : > { %975 = vmatpush3.bf16.msra.mxu0 %v454_v18  ;;  %1050 = vpow2.f32 %v280_v12 }
 0x3de   : > { %986 = vmatprep.subr.bf16.mxu0 %v1090_v0  ;;  %1052 = vpow2.f32 %v556_v19 }
 0x3df   : > { %v584_v21 = vpop.permute.xlu1 %583  ;;  %1054 = vpow2.f32 %v691_v16 }
 0x3e0   : > { %977 = vmatmul.mubr.msk.bf16.vlgmr.msra.gmra.mxu0 %vm274_vm3, %v447_v20  ;;  %v589_v13 = vsel %vm314_vm4, %v584_v21, 0  ;;  %1056 = vpow2.f32 %v421_v31 }
 0x3e1   : > { %v1047_v15 = vpop.eup %1046  ;;  %987 = vmatpush3.bf16.msra.mxu0 %v589_v13  ;;  %988 = vmatprep.mubr.msk.bf16.mxu0 %vm1091_vm1, %v1090_v0 }
 0x3e2   : > { %v569_v22 = vsel %vm274_vm3, %v1047_v15, 0.0  ;;  %998 = vmatprep.subr.bf16.mxu0 %v1090_v0  ;;  %v582_v24 = vpack.c.bf16 %v1047_v15, %v1047_v15 }
 0x3e3   : > { %570 = vadd.xlane.f32.xlu0 %v569_v22  ;;  %v719_v23 = vpop.permute.xlu1 %718 }
 0x3e4   : > { %v724_v25 = vsel %vm314_vm4, %v719_v23, 0 }
 0x3e8   : > { %989 = vmatmul.mubr.msk.bf16.vlgmr.msra.gmra.mxu0 %vm274_vm3, %v582_v24 }
 0x3e9   : > { %v1049_v26 = vpop.eup %1048  ;;  %999 = vmatpush3.bf16.msra.mxu0 %v724_v25  ;;  %1000 = vmatprep.mubr.msk.bf16.mxu0 %vm1091_vm1, %v1090_v0 }
 0x3ea   : > { %v704_v27 = vsel %vm274_vm3, %v1049_v26, 0.0  ;;  %v1051_v28 = vpop.eup %1050  ;;  %v717_v29 = vpack.c.bf16 %v1049_v26, %v1049_v26 }
 0x3eb   : > { %705 = vadd.xlane.f32.xlu0 %v704_v27  ;;  %v1053_v30 = vpop.eup %1052  ;;  %v291_v35 = vmul.f32 %v1051_v28, %v290_v34 }
 0x3ec   : > { %301 = vperm.xlu1 %1040, %v1051_v28   ;;  %v1055_v32 = vpop.eup %1054  ;;  %v568_v49 = vmul.f32 %v1053_v30, %v567_v46 }
 0x3ed   : > { %v1057_v37 = vpop.eup %1056  ;;  %v703_v54 = vmul.f32 %v1055_v32, %v702_v53 }
 0x3ee   : > { %v433_v41 = vmul.f32 %v1057_v37, %v432_v40 }
 0x3f0   : > { %1001 = vmatmul.mubr.msk.bf16.vlgmr.msra.gmra.mxu0 %vm274_vm3, %v717_v29  ;;  %578 = vperm.xlu1 %1040, %v1053_v30  }
 0x3f4   : > { %713 = vperm.xlu1 %1040, %v1055_v32  }
 0x3fc   : > { %v294_v0 = vpop.xlane.xlu0 %293 }
 0x3fd   : > { %v295_v36 = vadd.f32 %v294_v0, %v291_v35 }
 0x3ff   : > { %297 = vst.msk [vmem:[#allocation3] sm:$0xff] %vm210_vm2, %v295_v36 }
 0x401   : > { %443 = vperm.xlu0 %1039, %v1057_v37  }
 0x406   : > { %v773_v38 = vld [vmem:[#allocation3] sm:$0xff] }
 0x407   : > { %1058 = vrcp.f32 %v773_v38 }
 0x414   : > { %v1059_v39 = vpop.eup %1058 }
 0x415   : > { %777 = vperm.xlu0 %1039, %v1059_v39  }
 0x464   : > { %v436_v42 = vpop.xlane.xlu1 %435 }
 0x465   : > { %v437_v43 = vadd.f32 %v436_v42, %v433_v41 }
 0x467   : > { %438 = vst.msk [vmem:[#allocation3 + $0x8] sm:$0xff] %vm210_vm2, %v437_v43 }
 0x468   : > { %v302_v45 = vpop.permute.xlu1 %301 }
 0x469   : > { %v304_v47 = vmul.f32 %v302_v45, %v298_v44 }
 0x46b   : > { %v358_v48 = vadd.f32 %v1215_v33, %v304_v47 }
 0x46c   : > { %v571_v50 = vpop.xlane.xlu0 %570  ;;  %v579_v5 = vpop.permute.xlu1 %578 }
 0x46d   : > { %359 = vst.msk [vmem:[#allocation4] sm:$0xff] %vm219_vm0, %v358_v48  ;;  %v572_v51 = vadd.f32 %v571_v50, %v568_v49  ;;  %v581_v8 = vmul.f32 %v579_v5, %v575_v4 }
 0x46e   : > { %v782_v52 = vld [vmem:[#allocation3 + $0x8] sm:$0xff] }
 0x46f   : > { %573 = vst.msk [vmem:[#allocation3 + $0x10] sm:$0xff] %vm210_vm2, %v572_v51  ;;  %1060 = vrcp.f32 %v782_v52 }
 0x470   : > { %v714_v14 = vpop.permute.xlu1 %713 }
 0x471   : > { %v716_v19 = vmul.f32 %v714_v14, %v710_v11 }
 0x474   : > { %v706_v55 = vpop.xlane.xlu0 %705  ;;  %v772_v32 = vld [vmem:[#allocation4] sm:$0xff] }
 0x475   : > { %v707_v56 = vadd.f32 %v706_v55, %v703_v54 }
 0x476   : > { %v791_v57 = vld [vmem:[#allocation3 + $0x10] sm:$0xff] }
 0x477   : > { %708 = vst.msk [vmem:[#allocation3 + $0x18] sm:$0xff] %vm210_vm2, %v707_v56  ;;  %1062 = vrcp.f32 %v791_v57 }
 0x47c   : > { %v1061_v58 = vpop.eup %1060  ;;  %v444_v62 = vpop.permute.xlu0 %443 }
 0x47d   : > { %786 = vperm.xlu1 %1040, %v1061_v58   ;;  %v446_v63 = vmul.f32 %v444_v62, %v440_v61 }
 0x47e   : > { %v800_v33 = vld [vmem:[#allocation3 + $0x18] sm:$0xff] }
 0x47f   : > { %1064 = vrcp.f32 %v800_v33 }
 0x484   : > { %v1063_v59 = vpop.eup %1062 }
 0x485   : > { %795 = vperm.xlu0 %1039, %v1063_v59  }
 0x48c   : > { %v1065_v60 = vpop.eup %1064 }
 0x48d   : > { %804 = vperm.xlu1 %1040, %v1065_v60  }
 0x490   : > { %v778_v25 = vpop.permute.xlu0 %777 }
 0x491   : > { %v780_v35 = vmul.f32 %v778_v25, %v772_v32 }
 0x4a0   : > { %v490_v1 = vpop.f32.mrf.mxu0 }
 0x4a1   : > { %v496_v2 = vadd.f32 %v490_v1, %v446_v63 }
 0x4a2   : > { %v978_v3 = vpop.f32.mrf.mxu0 }
 0x4a3   : > { %497 = vst.msk [vmem:[#allocation4 + $0x8] sm:$0xff] %vm219_vm0, %v496_v2 }
 0x4a4   : > { %v493_v6 = vpop.f32.mrf.mxu0 }
 0x4a6   : > { %v979_v7 = vpop.f32.mrf.mxu0 }
 0x4a8   : > { %v625_v9 = vpop.f32.mrf.mxu0 }
 0x4a9   : > { %v631_v10 = vadd.f32 %v625_v9, %v581_v8 }
 0x4aa   : > { %v990_v12 = vpop.f32.mrf.mxu0  ;;  %v781_v23 = vld [vmem:[#allocation4 + $0x8] sm:$0xff] }
 0x4ab   : > { %632 = vst.msk [vmem:[#allocation4 + $0x10] sm:$0xff] %vm219_vm0, %v631_v10 }
 0x4ac   : > { %v628_v17 = vpop.f32.mrf.mxu0 }
 0x4ae   : > { %v991_v18 = vpop.f32.mrf.mxu0 }
 0x4b0   : > { %v760_v20 = vpop.f32.mrf.mxu0 }
 0x4b1   : > { %v766_v21 = vadd.f32 %v760_v20, %v716_v19 }
 0x4b2   : > { %v1002_v13 = vpop.f32.mrf.mxu0  ;;  %v790_v27 = vld [vmem:[#allocation4 + $0x10] sm:$0xff] }
 0x4b3   : > { %767 = vst.msk [vmem:[#allocation4 + $0x18] sm:$0xff] %vm219_vm0, %v766_v21 }
 0x4b4   : > { %v763_v15 = vpop.f32.mrf.mxu0 }
 0x4b6   : > { %v1003_v16 = vpop.f32.mrf.mxu0 }
 0x4ba   : > { %v799_v30 = vld [vmem:[#allocation4 + $0x18] sm:$0xff] }
 0x4f8   : > { %v787_v22 = vpop.permute.xlu1 %786 }
 0x4f9   : > { %v789_v24 = vmul.f32 %v787_v22, %v781_v23 }
 0x4fb   : > { %809 = vrot.lane.b32.xlu0 %v789_v24, %s1100_s26 }
 0x500   : > { %v796_v26 = vpop.permute.xlu0 %795 }
 0x501   : > { %v798_v28 = vmul.f32 %v796_v26, %v790_v27 }
 0x503   : > { %813 = vrot.lane.b32.xlu1 %v798_v28, %s1097_s23 }
 0x508   : > { %v805_v29 = vpop.permute.xlu1 %804 }
 0x509   : > { %v807_v31 = vmul.f32 %v805_v29, %v799_v30 }
 0x50b   : > { %817 = vrot.lane.b32.xlu0 %v807_v31, %s1099_s25 }
 0x56d   : > { %v810_v34 = vpop.permute.xlu0 %809 }
 0x56e   : > { %v820_v36 = vsel %vm219_vm0, %v780_v35, %v810_v34 }
 0x575   : > { %v814_v0 = vpop.permute.xlu1 %813 }
 0x576   : > { %v822_v37 = vsel %vm821_vm5, %v820_v36, %v814_v0 }
 0x57d   : > { %v818_v38 = vpop.permute.xlu0 %817 }
 0x57e   : > { %v824_v39 = vsel %vm823_vm6, %v822_v37, %v818_v38 }
 0x57f   : > { %v825_v40 = vpack.c.bf16 %v824_v39, %v824_v39 }
 0x581   : > { %827 = vst.msk [vmem:[%s204_s29] sm:$0xf] %vm826_vm7, %v825_v40 }
 0x582 PF: > { %s12_s11 = sadd.s32 1, %s1088_s11   ;;  %s1290_s9 = smov %s1084_s10 }
 0x583   : > { %p9_p5 = scmp.ge.s32.totalorder %s12_s11, 4   ;;  %s1291_s10 = smov %s1293_s12 }
 0x585   :  { %11 = sbr.rel (!%p9_p5) target bundleno = 2 (0x2), region = 78 }

</bundles_post_ra>
